<compile_context>
chip_gen: v6e
topology: v6e:2x2x1
jax: 0.10.0
libtpu: 0.0.40
codegen_flags: <defaults>
</compile_context>

<pallas_src>
import jax
import jax.numpy as jnp
from jax.experimental import pallas as pl
from jax.experimental.pallas import tpu as pltpu


def _make_kernel(wc):
    """Builds the fused BottleNeck kernel. `wc` = W * internal_channels."""

    def kernel(x_ref, wbig_ref, bbig_ref, dwt_ref, b2t_ref, w3k_ref, b3t_ref,
               su_ref, sd_ref, o_ref):
        f32 = jnp.float32
        x = x_ref[...].astype(f32)                         # (B*H, W*Cin)

        # One MXU matmul produces: expand(h,w), expand(h,w-1), expand(h,w+1)
        # (the lane-shifted copies needed by the depthwise taps, zero-filled at
        # the W borders via the host-built banded weights/biases) and the
        # shortcut conv. All slice offsets are multiples of 128 lanes.
        hs = jnp.dot(x, wbig_ref[...], preferred_element_type=f32) + bbig_ref[...]
        h1 = jnp.maximum(hs[:, 0 * wc:1 * wc], 0.0)        # expand @ (h, w)
        lm = jnp.maximum(hs[:, 1 * wc:2 * wc], 0.0)        # expand @ (h, w-1)
        lp = jnp.maximum(hs[:, 2 * wc:3 * wc], 0.0)        # expand @ (h, w+1)
        res = hs[:, 3 * wc:]                               # shortcut (no ReLU)

        # 3x3 depthwise (stride=1, pad=1), BN scale pre-folded into dwt rows.
        def row_group(ki):                                 # contributions read at row h+ki-1
            return (lm * dwt_ref[3 * ki + 0]
                    + h1 * dwt_ref[3 * ki + 1]
                    + lp * dwt_ref[3 * ki + 2])

        # su/sd are 0/1 "shift row by +/-1" matrices with the image-top/bottom
        # (and batch-boundary) rows already zeroed -> no masks in the kernel.
        acc = (jnp.dot(su_ref[...], row_group(0), preferred_element_type=f32)
               + row_group(1)
               + jnp.dot(sd_ref[...], row_group(2), preferred_element_type=f32))
        h2 = jnp.maximum(acc + b2t_ref[...], 0.0)          # (B*H, W*Cint)

        # pointwise 1x1 conv (+ folded BN) + ReLU
        h3 = jnp.dot(h2, w3k_ref[...], preferred_element_type=f32) + b3t_ref[...]
        h3 = jnp.maximum(h3, 0.0)

        # residual add + final ReLU (drop_path == Identity); (B*H, W*Cout) is
        # lane-dense (W*Cout = 128 here) -> unmasked full-vreg stores.
        o_ref[...] = jnp.maximum(h3 + res, 0.0).astype(o_ref.dtype)

    return kernel


@jax.jit
def bottleneck_forward(x_nchw, params):
    """Fused BottleNeck forward. Input/output are NCHW (PyTorch convention)."""
    B, Cin, H, W = x_nchw.shape
    Cint = params["w1"].shape[1]
    Cout = params["w3"].shape[1]
    BH, WCi, WC, WCo = B * H, W * Cin, W * Cint, W * Cout
    f32 = jnp.float32

    # ---- fold BN scales into conv weights (inference-mode folding) ----
    w1s = (params["w1"] * params["s1"][None, :]).astype(f32)        # (Cin, Cint)
    wss = (params["ws"] * params["ss"][None, :]).astype(f32)        # (Cin, Cout)
    w3s = (params["w3"] * params["s3"][None, :]).astype(f32)        # (Cint, Cout)
    dws = (params["dw"] * params["s2"][None, None, :]).astype(f32)  # (3, 3, Cint)

    # ---- lane-packed (kron) weights: lanes ordered (w, channel) ----
    eye_w = jnp.eye(W, dtype=f32)
    sh_m = jnp.eye(W, k=1, dtype=f32)    # output block w reads input block w-1
    sh_p = jnp.eye(W, k=-1, dtype=f32)   # output block w reads input block w+1
    wbig = jnp.concatenate([jnp.kron(eye_w, w1s),
                            jnp.kron(sh_m, w1s),
                            jnp.kron(sh_p, w1s),
                            jnp.kron(eye_w, wss)], axis=1)          # (W*Cin, 3*WC+WCo)

    b1t = jnp.tile(params["b1"].astype(f32), W)                     # (WC,)
    lane = jnp.arange(WC)
    b1_m = b1t * (lane >= Cint).astype(f32)      # zero at w == 0
    b1_p = b1t * (lane < WC - Cint).astype(f32)  # zero at w == W-1
    bst = jnp.tile(params["bs"].astype(f32), W)
    bbig = jnp.concatenate([b1t, b1_m, b1_p, bst])[None, :]         # (1, 3*WC+WCo)

    dwt = jnp.tile(dws.reshape(9, Cint), (1, W))                    # (9, WC)
    b2t = jnp.tile(params["b2"].astype(f32), W)[None, :]            # (1, WC)

    w3k = jnp.kron(eye_w, w3s)                                      # (WC, WCo)
    b3t = jnp.tile(params["b3"].astype(f32), W)[None, :]            # (1, WCo)

    # row-shift matrices (with top/bottom + batch-boundary masking folded in)
    hh = jnp.arange(BH) % H
    su = jnp.eye(BH, k=-1, dtype=f32) * (hh >= 1).astype(f32)[:, None]
    sd = jnp.eye(BH, k=1, dtype=f32) * (hh <= H - 2).astype(f32)[:, None]

    # NCHW -> lane-packed (B*H, W*Cin) activations
    x2d = jnp.transpose(x_nchw, (0, 2, 3, 1)).reshape(BH, WCi)

    def vmem_spec():
        return pl.BlockSpec(memory_space=pltpu.MemorySpace.VMEM)

    out2d = pl.pallas_call(
        _make_kernel(WC),
        out_shape=jax.ShapeDtypeStruct((BH, WCo), x_nchw.dtype),
        in_specs=[vmem_spec() for _ in range(9)],
        out_specs=vmem_spec(),
    )(x2d, wbig, bbig, dwt, b2t, w3k, b3t, su, sd)

    return jnp.transpose(out2d.reshape(B, H, W, Cout), (0, 3, 1, 2))  # -> NCHW


def _fold_bn(gamma, beta, mean, var, eps=1e-5):
    scale = gamma / jnp.sqrt(var + eps)
    shift = beta - mean * scale
    return scale, shift


def _reference(x_nchw, params):
    """Pure-JAX NHWC reference for validation."""
    x = jnp.transpose(x_nchw, (0, 2, 3, 1)).astype(jnp.float32)
    B, H, W, Cin = x.shape
    h1 = jnp.maximum(jnp.einsum("bhwc,cd->bhwd", x, params["w1"])
                     * params["s1"] + params["b1"], 0.0)
    p = jnp.pad(h1, ((0, 0), (1, 1), (1, 1), (0, 0)))
    acc = 0.0
    for ki in range(3):
        for kj in range(3):
            acc = acc + p[:, ki:ki + H, kj:kj + W, :] * params["dw"][ki, kj]
    h2 = jnp.maximum(acc * params["s2"] + params["b2"], 0.0)
    h3 = jnp.maximum(jnp.einsum("bhwc,cd->bhwd", h2, params["w3"])
                     * params["s3"] + params["b3"], 0.0)
    res = jnp.einsum("bhwc,cd->bhwd", x, params["ws"]) * params["ss"] + params["bs"]
    out = jnp.maximum(h3 + res, 0.0)
    return jnp.transpose(out, (0, 3, 1, 2))


if __name__ == "__main__":
    key = jax.random.PRNGKey(0)
    B, Cin, H, W = 2, 4, 16, 16
    expansion = 4
    Cint = int(Cin * expansion)       # internal_channels
    Cout = 8                          # out_channels != in_channels -> ConvBN shortcut

    ks = jax.random.split(key, 18)
    x = jax.random.normal(ks[0], (B, Cin, H, W), jnp.float32)

    # deterministic synthetic parameters (PyTorch shapes mapped to matmul layout)
    w1 = jax.random.normal(ks[1], (Cin, Cint), jnp.float32) * 0.3    # conv(Cint,Cin,1,1) -> (Cin,Cint)
    dw = jax.random.normal(ks[2], (3, 3, Cint), jnp.float32) * 0.3   # conv(Cint,1,3,3)   -> (3,3,Cint)
    w3 = jax.random.normal(ks[3], (Cint, Cout), jnp.float32) * 0.3   # conv(Cout,Cint,1,1)-> (Cint,Cout)
    ws = jax.random.normal(ks[4], (Cin, Cout), jnp.float32) * 0.3    # shortcut conv      -> (Cin,Cout)

    def bn_params(k, c):
        k1, k2, k3, k4 = jax.random.split(k, 4)
        gamma = 1.0 + 0.1 * jax.random.normal(k1, (c,), jnp.float32)
        beta = 0.1 * jax.random.normal(k2, (c,), jnp.float32)
        mean = 0.1 * jax.random.normal(k3, (c,), jnp.float32)
        var = jnp.abs(1.0 + 0.1 * jax.random.normal(k4, (c,), jnp.float32))
        return _fold_bn(gamma, beta, mean, var)

    s1, b1 = bn_params(ks[5], Cint)   # BN of pw_conv
    s2, b2 = bn_params(ks[6], Cint)   # BN of depthwise conv
    s3, b3 = bn_params(ks[7], Cout)   # BN of pointwise conv
    ss, bs = bn_params(ks[8], Cout)   # BN of shortcut

    params = dict(w1=w1, s1=s1, b1=b1, dw=dw, s2=s2, b2=b2,
                  w3=w3, s3=s3, b3=b3, ws=ws, ss=ss, bs=bs)

    out = bottleneck_forward(x, params)
    jax.block_until_ready(out)

    ref = _reference(x, params)
    assert out.shape == (B, Cout, H, W), out.shape
    # small headroom for MXU f32 pass decomposition differences
    max_err = float(jnp.max(jnp.abs(out - ref)))
    assert jnp.allclose(out, ref, atol=1e-3, rtol=1e-3), max_err

    print("KERNEL_OK")
</pallas_src>

<mosaic_0001>
module attributes {stable_mosaic.version = 11 : i64} {
  func.func @kernel(%arg0: memref<32x64xf32, #tpu.memory_space<vmem>>, %arg1: memref<64x896xf32, #tpu.memory_space<vmem>>, %arg2: memref<1x896xf32, #tpu.memory_space<vmem>>, %arg3: memref<9x256xf32, #tpu.memory_space<vmem>>, %arg4: memref<1x256xf32, #tpu.memory_space<vmem>>, %arg5: memref<256x128xf32, #tpu.memory_space<vmem>>, %arg6: memref<1x128xf32, #tpu.memory_space<vmem>>, %arg7: memref<32x32xf32, #tpu.memory_space<vmem>>, %arg8: memref<32x32xf32, #tpu.memory_space<vmem>>, %arg9: memref<32x128xf32, #tpu.memory_space<vmem>>) attributes {dimension_semantics = [], scalar_prefetch = 0 : i64, scratch_operands = 0 : i64, tpu.core_type = #tpu.core_type<tc>} {
    %c0 = arith.constant 0 : index
    %c0_0 = arith.constant 0 : index
    %0 = vector.load %arg0[%c0, %c0_0] : memref<32x64xf32, #tpu.memory_space<vmem>>, vector<32x64xf32>
    %c0_1 = arith.constant 0 : index
    %c0_2 = arith.constant 0 : index
    %1 = vector.load %arg1[%c0_1, %c0_2] : memref<64x896xf32, #tpu.memory_space<vmem>>, vector<64x896xf32>
    %cst = arith.constant dense<0.000000e+00> : vector<32x896xf32>
    %2 = tpu.matmul %0, %1, %cst {dimension_numbers = #tpu.dot_dimension_numbers<[1], [0], [0], [1], [0, 0, 1, 1], [], []>} : vector<32x64xf32>, vector<64x896xf32>, vector<32x896xf32> -> vector<32x896xf32>
    %c0_3 = arith.constant 0 : index
    %c0_4 = arith.constant 0 : index
    %3 = vector.load %arg2[%c0_3, %c0_4] : memref<1x896xf32, #tpu.memory_space<vmem>>, vector<1x896xf32>
    %4 = vector.broadcast %3 : vector<1x896xf32> to vector<32x896xf32>
    %5 = arith.addf %2, %4 : vector<32x896xf32>
    %6 = vector.extract_strided_slice %5 {offsets = [0, 0], sizes = [32, 256], strides = [1, 1]} : vector<32x896xf32> to vector<32x256xf32>
    %cst_5 = arith.constant 0.000000e+00 : f32
    %7 = vector.broadcast %cst_5 : f32 to vector<32x256xf32>
    %8 = arith.maximumf %6, %7 : vector<32x256xf32>
    %9 = vector.extract_strided_slice %5 {offsets = [0, 256], sizes = [32, 256], strides = [1, 1]} : vector<32x896xf32> to vector<32x256xf32>
    %cst_6 = arith.constant 0.000000e+00 : f32
    %10 = vector.broadcast %cst_6 : f32 to vector<32x256xf32>
    %11 = arith.maximumf %9, %10 : vector<32x256xf32>
    %12 = vector.extract_strided_slice %5 {offsets = [0, 512], sizes = [32, 256], strides = [1, 1]} : vector<32x896xf32> to vector<32x256xf32>
    %cst_7 = arith.constant 0.000000e+00 : f32
    %13 = vector.broadcast %cst_7 : f32 to vector<32x256xf32>
    %14 = arith.maximumf %12, %13 : vector<32x256xf32>
    %15 = vector.extract_strided_slice %5 {offsets = [0, 768], sizes = [32, 128], strides = [1, 1]} : vector<32x896xf32> to vector<32x128xf32>
    %c0_8 = arith.constant 0 : index
    %c0_9 = arith.constant 0 : index
    %16 = vector.load %arg7[%c0_8, %c0_9] : memref<32x32xf32, #tpu.memory_space<vmem>>, vector<32x32xf32>
    %c0_10 = arith.constant 0 : index
    %c0_11 = arith.constant 0 : index
    %17 = vector.load %arg3[%c0_10, %c0_11] : memref<9x256xf32, #tpu.memory_space<vmem>>, vector<1x256xf32>
    %18 = vector.shape_cast %17 : vector<1x256xf32> to vector<256xf32>
    %19 = vector.shape_cast %18 : vector<256xf32> to vector<1x256xf32>
    %20 = vector.broadcast %19 : vector<1x256xf32> to vector<32x256xf32>
    %21 = arith.mulf %11, %20 : vector<32x256xf32>
    %c1 = arith.constant 1 : index
    %c0_12 = arith.constant 0 : index
    %22 = vector.load %arg3[%c1, %c0_12] : memref<9x256xf32, #tpu.memory_space<vmem>>, vector<1x256xf32>
    %23 = vector.shape_cast %22 : vector<1x256xf32> to vector<256xf32>
    %24 = vector.shape_cast %23 : vector<256xf32> to vector<1x256xf32>
    %25 = vector.broadcast %24 : vector<1x256xf32> to vector<32x256xf32>
    %26 = arith.mulf %8, %25 : vector<32x256xf32>
    %27 = arith.addf %21, %26 : vector<32x256xf32>
    %c2 = arith.constant 2 : index
    %c0_13 = arith.constant 0 : index
    %28 = vector.load %arg3[%c2, %c0_13] : memref<9x256xf32, #tpu.memory_space<vmem>>, vector<1x256xf32>
    %29 = vector.shape_cast %28 : vector<1x256xf32> to vector<256xf32>
    %30 = vector.shape_cast %29 : vector<256xf32> to vector<1x256xf32>
    %31 = vector.broadcast %30 : vector<1x256xf32> to vector<32x256xf32>
    %32 = arith.mulf %14, %31 : vector<32x256xf32>
    %33 = arith.addf %27, %32 : vector<32x256xf32>
    %cst_14 = arith.constant dense<0.000000e+00> : vector<32x256xf32>
    %34 = tpu.matmul %16, %33, %cst_14 {dimension_numbers = #tpu.dot_dimension_numbers<[1], [0], [0], [1], [0, 0, 1, 1], [], []>} : vector<32x32xf32>, vector<32x256xf32>, vector<32x256xf32> -> vector<32x256xf32>
    %c3 = arith.constant 3 : index
    %c0_15 = arith.constant 0 : index
    %35 = vector.load %arg3[%c3, %c0_15] : memref<9x256xf32, #tpu.memory_space<vmem>>, vector<1x256xf32>
    %36 = vector.shape_cast %35 : vector<1x256xf32> to vector<256xf32>
    %37 = vector.shape_cast %36 : vector<256xf32> to vector<1x256xf32>
    %38 = vector.broadcast %37 : vector<1x256xf32> to vector<32x256xf32>
    %39 = arith.mulf %11, %38 : vector<32x256xf32>
    %c4 = arith.constant 4 : index
    %c0_16 = arith.constant 0 : index
    %40 = vector.load %arg3[%c4, %c0_16] : memref<9x256xf32, #tpu.memory_space<vmem>>, vector<1x256xf32>
    %41 = vector.shape_cast %40 : vector<1x256xf32> to vector<256xf32>
    %42 = vector.shape_cast %41 : vector<256xf32> to vector<1x256xf32>
    %43 = vector.broadcast %42 : vector<1x256xf32> to vector<32x256xf32>
    %44 = arith.mulf %8, %43 : vector<32x256xf32>
    %45 = arith.addf %39, %44 : vector<32x256xf32>
    %c5 = arith.constant 5 : index
    %c0_17 = arith.constant 0 : index
    %46 = vector.load %arg3[%c5, %c0_17] : memref<9x256xf32, #tpu.memory_space<vmem>>, vector<1x256xf32>
    %47 = vector.shape_cast %46 : vector<1x256xf32> to vector<256xf32>
    %48 = vector.shape_cast %47 : vector<256xf32> to vector<1x256xf32>
    %49 = vector.broadcast %48 : vector<1x256xf32> to vector<32x256xf32>
    %50 = arith.mulf %14, %49 : vector<32x256xf32>
    %51 = arith.addf %45, %50 : vector<32x256xf32>
    %52 = arith.addf %34, %51 : vector<32x256xf32>
    %c0_18 = arith.constant 0 : index
    %c0_19 = arith.constant 0 : index
    %53 = vector.load %arg8[%c0_18, %c0_19] : memref<32x32xf32, #tpu.memory_space<vmem>>, vector<32x32xf32>
    %c6 = arith.constant 6 : index
    %c0_20 = arith.constant 0 : index
    %54 = vector.load %arg3[%c6, %c0_20] : memref<9x256xf32, #tpu.memory_space<vmem>>, vector<1x256xf32>
    %55 = vector.shape_cast %54 : vector<1x256xf32> to vector<256xf32>
    %56 = vector.shape_cast %55 : vector<256xf32> to vector<1x256xf32>
    %57 = vector.broadcast %56 : vector<1x256xf32> to vector<32x256xf32>
    %58 = arith.mulf %11, %57 : vector<32x256xf32>
    %c7 = arith.constant 7 : index
    %c0_21 = arith.constant 0 : index
    %59 = vector.load %arg3[%c7, %c0_21] : memref<9x256xf32, #tpu.memory_space<vmem>>, vector<1x256xf32>
    %60 = vector.shape_cast %59 : vector<1x256xf32> to vector<256xf32>
    %61 = vector.shape_cast %60 : vector<256xf32> to vector<1x256xf32>
    %62 = vector.broadcast %61 : vector<1x256xf32> to vector<32x256xf32>
    %63 = arith.mulf %8, %62 : vector<32x256xf32>
    %64 = arith.addf %58, %63 : vector<32x256xf32>
    %c8 = arith.constant 8 : index
    %c0_22 = arith.constant 0 : index
    %65 = vector.load %arg3[%c8, %c0_22] : memref<9x256xf32, #tpu.memory_space<vmem>>, vector<1x256xf32>
    %66 = vector.shape_cast %65 : vector<1x256xf32> to vector<256xf32>
    %67 = vector.shape_cast %66 : vector<256xf32> to vector<1x256xf32>
    %68 = vector.broadcast %67 : vector<1x256xf32> to vector<32x256xf32>
    %69 = arith.mulf %14, %68 : vector<32x256xf32>
    %70 = arith.addf %64, %69 : vector<32x256xf32>
    %cst_23 = arith.constant dense<0.000000e+00> : vector<32x256xf32>
    %71 = tpu.matmul %53, %70, %cst_23 {dimension_numbers = #tpu.dot_dimension_numbers<[1], [0], [0], [1], [0, 0, 1, 1], [], []>} : vector<32x32xf32>, vector<32x256xf32>, vector<32x256xf32> -> vector<32x256xf32>
    %72 = arith.addf %52, %71 : vector<32x256xf32>
    %c0_24 = arith.constant 0 : index
    %c0_25 = arith.constant 0 : index
    %73 = vector.load %arg4[%c0_24, %c0_25] : memref<1x256xf32, #tpu.memory_space<vmem>>, vector<1x256xf32>
    %74 = vector.broadcast %73 : vector<1x256xf32> to vector<32x256xf32>
    %75 = arith.addf %72, %74 : vector<32x256xf32>
    %cst_26 = arith.constant 0.000000e+00 : f32
    %76 = vector.broadcast %cst_26 : f32 to vector<32x256xf32>
    %77 = arith.maximumf %75, %76 : vector<32x256xf32>
    %c0_27 = arith.constant 0 : index
    %c0_28 = arith.constant 0 : index
    %78 = vector.load %arg5[%c0_27, %c0_28] : memref<256x128xf32, #tpu.memory_space<vmem>>, vector<256x128xf32>
    %cst_29 = arith.constant dense<0.000000e+00> : vector<32x128xf32>
    %79 = tpu.matmul %77, %78, %cst_29 {dimension_numbers = #tpu.dot_dimension_numbers<[1], [0], [0], [1], [0, 0, 1, 1], [], []>} : vector<32x256xf32>, vector<256x128xf32>, vector<32x128xf32> -> vector<32x128xf32>
    %c0_30 = arith.constant 0 : index
    %c0_31 = arith.constant 0 : index
    %80 = vector.load %arg6[%c0_30, %c0_31] : memref<1x128xf32, #tpu.memory_space<vmem>>, vector<1x128xf32>
    %81 = vector.broadcast %80 : vector<1x128xf32> to vector<32x128xf32>
    %82 = arith.addf %79, %81 : vector<32x128xf32>
    %cst_32 = arith.constant 0.000000e+00 : f32
    %83 = vector.broadcast %cst_32 : f32 to vector<32x128xf32>
    %84 = arith.maximumf %82, %83 : vector<32x128xf32>
    %85 = arith.addf %84, %15 : vector<32x128xf32>
    %cst_33 = arith.constant 0.000000e+00 : f32
    %86 = vector.broadcast %cst_33 : f32 to vector<32x128xf32>
    %87 = arith.maximumf %85, %86 : vector<32x128xf32>
    %c0_34 = arith.constant 0 : index
    %c0_35 = arith.constant 0 : index
    %88 = vector.load %arg9[%c0_34, %c0_35] : memref<32x128xf32, #tpu.memory_space<vmem>>, vector<32x128xf32>
    tpu.vector_store %arg9[%c0_34, %c0_35], %87 {strides = array<i32>} : memref<32x128xf32, #tpu.memory_space<vmem>>, vector<32x128xf32>,
    return
  }
}

</mosaic_0001>

<bundles_post_ra>
// kernel: tile.27
= control target key start
LH: loop header
LB: loop body
LE: loop exit
PB: predicated region body
PF: predicated region fallthrough
CT: control target
= control target key end

     0   :  { %s28_s0 = inlined_call_operand.vmem [shape: f32[16], index: 0, kind: input, shape index: {}]   ;;  %s29_s1 = inlined_call_operand.vmem [shape: f32[16,16], index: 1, kind: output, shape index: {}]  }
   0x1   :  { %v4_v0 = vld [vmem:[%s28_s0] ss:$0 sm:$0xff] }
   0x2   :  { %5 = vst [vmem:[%s29_s1] sm:$0xff] %v4_v0  ;;  %8 = vst [vmem:[%s29_s1 + $0x8] sm:$0xff] %v4_v0 }

// kernel: tile.28
= control target key start
LH: loop header
LB: loop body
LE: loop exit
PB: predicated region body
PF: predicated region fallthrough
CT: control target
= control target key end

     0   :  { %s7_s6 = smov 3  ;;  %s21_s9 = smov 3  ;;  %vm4_vm0 = vcmask 130048   ;;  %vm11_vm1 = vcmask 1048448   ;;  %vm18_vm2 = vcmask 917248   ;;  %vm25_vm3 = vcmask 786048   ;;  %s121_s0 = inlined_call_operand.vmem [shape: f32[16,16], index: 0, kind: input, shape index: {}]   ;;  %s122_s1 = inlined_call_operand.vmem [shape: f32[256], index: 1, kind: output, shape index: {}]  }
   0x1   :  { %v63_v0 = vld [vmem:[%s121_s0 + $0x7] ss:$8 sm:%s7_s6]   ;;  %s77_s10 = smov 112   ;;  %v65_v1 = vld [vmem:[%s121_s0 + $0x5] ss:$8 sm:%s21_s9]   ;;  %s14_s13 = smov 3 }
   0x2   :  { %9 = vrot.lane.b32.xlu0 %v63_v0, %s77_s10  ;;  %s78_s14 = smov 80   ;;  %v64_v2 = vld [vmem:[%s121_s0 + $0x6] ss:$8 sm:%s14_s13]   ;;  %s28_s17 = smov 3  ;;  %vm32_vm4 = vcmask 654848   ;;  %vm39_vm5 = vcmask 523648  }
   0x3   :  { %23 = vrot.lane.b32.xlu1 %v65_v1, %s78_s14  ;;  %v66_v3 = vld [vmem:[%s121_s0 + $0x4] ss:$8 sm:%s28_s17]   ;;  %s35_s20 = smov 3  ;;  %s42_s21 = smov 3  ;;  %vm46_vm6 = vcmask 392448   ;;  %vm53_vm7 = vcmask 261248  }
   0x4   :  { %s79_s22 = smov 96   ;;  %s80_s23 = smov 64   ;;  %v67_v4 = vld [vmem:[%s121_s0 + $0x3] ss:$8 sm:%s35_s20]   ;;  %v68_v5 = vld [vmem:[%s121_s0 + $0x2] ss:$8 sm:%s42_s21]  }
   0x5   :  { %s2_s26 = smov 3  ;;  %s49_s29 = smov 3 }
   0x6   :  { %16 = vrot.lane.b32.xlu0 %v64_v2, %s79_s22  ;;  %v3_v6 = vld [vmem:[%s121_s0] ss:$8 sm:%s2_s26]   ;;  %s81_s3 = smov 48   ;;  %s82_s4 = smov 32  }
   0x7   :  { %30 = vrot.lane.b32.xlu1 %v66_v3, %s80_s23  ;;  %5 = vst.msk [vmem:[#allocation0] sm:$0x3] %vm4_vm0, %v3_v6   ;;  %v69_v7 = vld [vmem:[%s121_s0 + $0x1] ss:$8 sm:%s49_s29]   ;;  %s83_s0 = smov 16  }
   0xa   :  { %37 = vrot.lane.b32.xlu0 %v67_v4, %s81_s3 }
   0xb   :  { %44 = vrot.lane.b32.xlu1 %v68_v5, %s82_s4 }
   0xe   :  { %51 = vrot.lane.b32.xlu0 %v69_v7, %s83_s0 }
  0x74   :  { %v10_v8 = vpop.permute.xlu0 %9  }
  0x75   :  { %12 = vst.msk [vmem:[#allocation0] sm:$0x3] %vm11_vm1, %v10_v8   ;;  %v24_v9 = vpop.permute.xlu1 %23  }
  0x78   :  { %v17_v10 = vpop.permute.xlu0 %16  }
  0x79   :  { %19 = vst.msk [vmem:[#allocation0] sm:$0x3] %vm18_vm2, %v17_v10   ;;  %v31_v11 = vpop.permute.xlu1 %30  }
  0x7a   :  { %26 = vst.msk [vmem:[#allocation0] sm:$0x3] %vm25_vm3, %v24_v9  }
  0x7b   :  { %33 = vst.msk [vmem:[#allocation0] sm:$0x3] %vm32_vm4, %v31_v11  }
  0x7c   :  { %v38_v12 = vpop.permute.xlu0 %37  }
  0x7d   :  { %40 = vst.msk [vmem:[#allocation0] sm:$0x3] %vm39_vm5, %v38_v12   ;;  %v45_v13 = vpop.permute.xlu1 %44  }
  0x7e   :  { %47 = vst.msk [vmem:[#allocation0] sm:$0x3] %vm46_vm6, %v45_v13  }
  0x80   :  { %v52_v14 = vpop.permute.xlu0 %51  }
  0x81   :  { %54 = vst.msk [vmem:[#allocation0] sm:$0x3] %vm53_vm7, %v52_v14  }
  0x88   :  { %v59_v15 = vld [vmem:[#allocation0] sm:$0x3] }
  0x89   :  { %62 = vst [vmem:[%s122_s1] sm:$0x3] %v59_v15 }

// kernel: tile.32
= control target key start
LH: loop header
LB: loop body
LE: loop exit
PB: predicated region body
PF: predicated region fallthrough
CT: control target
= control target key end

     0   :  { %s28_s0 = inlined_call_operand.vmem [shape: f32[8], index: 0, kind: input, shape index: {}]   ;;  %s29_s1 = inlined_call_operand.vmem [shape: f32[16,8], index: 1, kind: output, shape index: {}]  }
   0x1   :  { %v4_v0 = vld [vmem:[%s28_s0] ss:$0 sm:$0xff] }
   0x2   :  { %5 = vst [vmem:[%s29_s1] sm:$0xff] %v4_v0  ;;  %8 = vst [vmem:[%s29_s1 + $0x8] sm:$0xff] %v4_v0 }

// kernel: tile.33
= control target key start
LH: loop header
LB: loop body
LE: loop exit
PB: predicated region body
PF: predicated region fallthrough
CT: control target
= control target key end

     0   :  { %s133_s10 = smov 120   ;;  %s134_s11 = smov 104   ;;  %vm3_vm0 = vcmask 64512   ;;  %vm9_vm1 = vcmask 1048512   ;;  %vm15_vm2 = vcmask 982912   ;;  %vm21_vm3 = vcmask 917312   ;;  %s209_s0 = inlined_call_operand.vmem [shape: f32[16,8], index: 0, kind: input, shape index: {}]   ;;  %s210_s1 = inlined_call_operand.vmem [shape: f32[128], index: 1, kind: output, shape index: {}]  }
   0x1   :  { %v103_v0 = vld [vmem:[%s209_s0 + $0xf] sm:$0x1]   ;;  %v105_v1 = vld [vmem:[%s209_s0 + $0xd] sm:$0x1]   ;;  %v104_v2 = vld [vmem:[%s209_s0 + $0xe] sm:$0x1]  }
   0x2   :  { %7 = vrot.lane.b32.xlu0 %v103_v0, %s133_s10  ;;  %19 = vrot.lane.b32.xlu1 %v105_v1, %s134_s11  ;;  %v106_v3 = vld [vmem:[%s209_s0 + $0xc] sm:$0x1]   ;;  %s135_s16 = smov 112   ;;  %s136_s17 = smov 96   ;;  %v107_v4 = vld [vmem:[%s209_s0 + $0xb] sm:$0x1]  }
   0x3   :  { %v108_v5 = vld [vmem:[%s209_s0 + $0xa] sm:$0x1]   ;;  %v2_v6 = vld [vmem:[%s209_s0] sm:$0x1]   ;;  %s137_s24 = smov 88   ;;  %s138_s25 = smov 80  }
   0x4   :  { %4 = vst.msk [vmem:[#allocation0] sm:$0x1] %vm3_vm0, %v2_v6   ;;  %v109_v7 = vld [vmem:[%s209_s0 + $0x9] sm:$0x1]   ;;  %v110_v8 = vld [vmem:[%s209_s0 + $0x8] sm:$0x1]  }
   0x5   :  { %s139_s30 = smov 72   ;;  %s140_s2 = smov 64   ;;  %v111_v9 = vld [vmem:[%s209_s0 + $0x7] sm:$0x1]   ;;  %v112_v10 = vld [vmem:[%s209_s0 + $0x6] sm:$0x1]  }
   0x6   :  { %13 = vrot.lane.b32.xlu0 %v104_v2, %s135_s16  ;;  %25 = vrot.lane.b32.xlu1 %v106_v3, %s136_s17  ;;  %s141_s7 = smov 56   ;;  %s142_s8 = smov 48   ;;  %v113_v11 = vld [vmem:[%s209_s0 + $0x5] sm:$0x1]   ;;  %v114_v12 = vld [vmem:[%s209_s0 + $0x4] sm:$0x1]  }
   0x7   :  { %s143_s13 = smov 40   ;;  %s144_s14 = smov 32   ;;  %v115_v13 = vld [vmem:[%s209_s0 + $0x3] sm:$0x1]   ;;  %v116_v14 = vld [vmem:[%s209_s0 + $0x2] sm:$0x1]  }
   0x8   :  { %s145_s19 = smov 24   ;;  %s146_s20 = smov 16   ;;  %v117_v15 = vld [vmem:[%s209_s0 + $0x1] sm:$0x1]   ;;  %vm27_vm4 = vcmask 851712   ;;  %vm33_vm5 = vcmask 786112  }
   0x9   :  { %s147_s0 = smov 8   ;;  %vm39_vm6 = vcmask 720512   ;;  %vm45_vm7 = vcmask 654912   ;;  %vm51_vm8 = vcmask 589312   ;;  %vm57_vm9 = vcmask 523712  }
   0xa   :  { %31 = vrot.lane.b32.xlu0 %v107_v4, %s137_s24  ;;  %37 = vrot.lane.b32.xlu1 %v108_v5, %s138_s25  ;;  %vm63_vm10 = vcmask 458112   ;;  %vm69_vm11 = vcmask 392512   ;;  %vm75_vm12 = vcmask 326912   ;;  %vm81_vm13 = vcmask 261312  }
   0xb   :  { %vm87_vm14 = vcmask 195712   ;;  %vm93_vm15 = vcmask 130112  }
   0xe   :  { %43 = vrot.lane.b32.xlu0 %v109_v7, %s139_s30  ;;  %49 = vrot.lane.b32.xlu1 %v110_v8, %s140_s2 }
  0x12   :  { %55 = vrot.lane.b32.xlu0 %v111_v9, %s141_s7  ;;  %61 = vrot.lane.b32.xlu1 %v112_v10, %s142_s8 }
  0x16   :  { %67 = vrot.lane.b32.xlu0 %v113_v11, %s143_s13  ;;  %73 = vrot.lane.b32.xlu1 %v114_v12, %s144_s14 }
  0x1a   :  { %79 = vrot.lane.b32.xlu0 %v115_v13, %s145_s19  ;;  %85 = vrot.lane.b32.xlu1 %v116_v14, %s146_s20 }
  0x1e   :  { %91 = vrot.lane.b32.xlu0 %v117_v15, %s147_s0 }
  0x74   :  { %v8_v16 = vpop.permute.xlu0 %7   ;;  %v20_v17 = vpop.permute.xlu1 %19  }
  0x75   :  { %10 = vst.msk [vmem:[#allocation0] sm:$0x1] %vm9_vm1, %v8_v16  }
  0x78   :  { %v14_v18 = vpop.permute.xlu0 %13   ;;  %v26_v19 = vpop.permute.xlu1 %25  }
  0x79   :  { %16 = vst.msk [vmem:[#allocation0] sm:$0x1] %vm15_vm2, %v14_v18  }
  0x7a   :  { %22 = vst.msk [vmem:[#allocation0] sm:$0x1] %vm21_vm3, %v20_v17  }
  0x7b   :  { %28 = vst.msk [vmem:[#allocation0] sm:$0x1] %vm27_vm4, %v26_v19  }
  0x7c   :  { %v32_v20 = vpop.permute.xlu0 %31   ;;  %v38_v21 = vpop.permute.xlu1 %37  }
  0x7d   :  { %34 = vst.msk [vmem:[#allocation0] sm:$0x1] %vm33_vm5, %v32_v20  }
  0x7e   :  { %40 = vst.msk [vmem:[#allocation0] sm:$0x1] %vm39_vm6, %v38_v21  }
  0x80   :  { %v44_v22 = vpop.permute.xlu0 %43   ;;  %v50_v23 = vpop.permute.xlu1 %49  }
  0x81   :  { %46 = vst.msk [vmem:[#allocation0] sm:$0x1] %vm45_vm7, %v44_v22  }
  0x82   :  { %52 = vst.msk [vmem:[#allocation0] sm:$0x1] %vm51_vm8, %v50_v23  }
  0x84   :  { %v56_v24 = vpop.permute.xlu0 %55   ;;  %v62_v25 = vpop.permute.xlu1 %61  }
  0x85   :  { %58 = vst.msk [vmem:[#allocation0] sm:$0x1] %vm57_vm9, %v56_v24  }
  0x86   :  { %64 = vst.msk [vmem:[#allocation0] sm:$0x1] %vm63_vm10, %v62_v25  }
  0x88   :  { %v68_v26 = vpop.permute.xlu0 %67   ;;  %v74_v27 = vpop.permute.xlu1 %73  }
  0x89   :  { %70 = vst.msk [vmem:[#allocation0] sm:$0x1] %vm69_vm11, %v68_v26  }
  0x8a   :  { %76 = vst.msk [vmem:[#allocation0] sm:$0x1] %vm75_vm12, %v74_v27  }
  0x8c   :  { %v80_v28 = vpop.permute.xlu0 %79   ;;  %v86_v29 = vpop.permute.xlu1 %85  }
  0x8d   :  { %82 = vst.msk [vmem:[#allocation0] sm:$0x1] %vm81_vm13, %v80_v28  }
  0x8e   :  { %88 = vst.msk [vmem:[#allocation0] sm:$0x1] %vm87_vm14, %v86_v29  }
  0x90   :  { %v92_v30 = vpop.permute.xlu0 %91  }
  0x91   :  { %94 = vst.msk [vmem:[#allocation0] sm:$0x1] %vm93_vm15, %v92_v30  }
  0x98   :  { %v99_v31 = vld [vmem:[#allocation0] sm:$0x1] }
  0x99   :  { %102 = vst [vmem:[%s210_s1] sm:$0x1] %v99_v31 }

// kernel: tile.37
= control target key start
LH: loop header
LB: loop body
LE: loop exit
PB: predicated region body
PF: predicated region fallthrough
CT: control target
= control target key end

     0   :  { %s36_s6 = smov 3  ;;  %s39_s7 = smov 12  ;;  %vm41_vm0 = vcmask 1043458   ;;  %vm46_vm1 = vcmask 1045508   ;;  %vm51_vm2 = vcmask 1047558   ;;  %vm4_vm3 = vcmask 1047556   ;;  %s865_s0 = inlined_call_operand.vmem [shape: f32[9,16,16], index: 0, kind: input, shape index: {}]   ;;  %s866_s1 = inlined_call_operand.vmem [shape: f32[9,256], index: 1, kind: output, shape index: {}]  }
   0x1   :  { %v417_v0 = vld [vmem:[%s865_s0 + $0x7] ss:$16 sm:%s36_s6]   ;;  %s44_s12 = smov 48  ;;  %s49_s13 = smov 192  ;;  %vm6_vm4 = vcmask 130048   ;;  %vm55_vm5 = vcmask 1048448  }
   0x2   :  { %v418_v1 = vld [vmem:[%s865_s0 + $0x7] ss:$16 sm:%s39_s7]   ;;  %s81_s18 = smov 3  ;;  %s58_s21 = smov 3  ;;  %vm108_vm6 = vcmask 917248   ;;  %vm161_vm7 = vcmask 786048  }
   0x3   :  { %v42_v2 = vsel %vm41_vm0, %v418_v1, %v417_v0  ;;  %v419_v3 = vld [vmem:[%s865_s0 + $0x7] ss:$16 sm:%s44_s12]   ;;  %s61_s22 = smov 12  ;;  %s501_s23 = smov 112   ;;  %v421_v8 = vld [vmem:[%s865_s0 + $0xf] ss:$16 sm:%s58_s21]  }
   0x4   :  { %v420_v4 = vld [vmem:[%s865_s0 + $0x7] ss:$16 sm:%s49_s13]   ;;  %v47_v5 = vsel %vm46_vm1, %v419_v3, %v42_v2  ;;  %s66_s26 = smov 48  ;;  %s71_s27 = smov 192  ;;  %v422_v9 = vld [vmem:[%s865_s0 + $0xf] ss:$16 sm:%s61_s22]  }
   0x5   :  { %v426_v6 = vld [vmem:[%s865_s0 + $0x87] ss:$8 sm:%s81_s18]   ;;  %v52_v7 = vsel %vm51_vm2, %v420_v4, %v47_v5  ;;  %s89_s30 = smov 3  ;;  %s92_s2 = smov 12  ;;  %v64_v10 = vsel %vm41_vm0, %v422_v9, %v421_v8  ;;  %vm214_vm8 = vcmask 654848   ;;  %vm267_vm9 = vcmask 523648  }
   0x6   :  { %83 = vrot.lane.b32.xlu1 %v426_v6, %s501_s23  ;;  %53 = vrot.lane.b32.xlu0 %v52_v7, %s501_s23  ;;  %v423_v11 = vld [vmem:[%s865_s0 + $0xf] ss:$16 sm:%s66_s26]   ;;  %s97_s7 = smov 48  ;;  %s102_s8 = smov 192  ;;  %vm320_vm10 = vcmask 392448   ;;  %vm373_vm11 = vcmask 261248  }
   0x7   :  { %v424_v12 = vld [vmem:[%s865_s0 + $0xf] ss:$16 sm:%s71_s27]   ;;  %v69_v13 = vsel %vm46_vm1, %v423_v11, %v64_v10  ;;  %v428_v14 = vld [vmem:[%s865_s0 + $0x6] ss:$16 sm:%s89_s30]   ;;  %s111_s13 = smov 3  ;;  %s114_s18 = smov 12 }
   0x8   :  { %v429_v15 = vld [vmem:[%s865_s0 + $0x6] ss:$16 sm:%s92_s2]   ;;  %v74_v16 = vsel %vm51_vm2, %v424_v12, %v69_v13  ;;  %s119_s19 = smov 48  ;;  %v432_v21 = vld [vmem:[%s865_s0 + $0xe] ss:$16 sm:%s111_s13]   ;;  %s124_s22 = smov 192 }
   0x9   :  { %v95_v17 = vsel %vm41_vm0, %v429_v15, %v428_v14  ;;  %v430_v18 = vld [vmem:[%s865_s0 + $0x6] ss:$16 sm:%s97_s7]   ;;  %v433_v23 = vld [vmem:[%s865_s0 + $0xe] ss:$16 sm:%s114_s18]   ;;  %s142_s28 = smov 3  ;;  %s145_s29 = smov 12 }
   0xa   :  { %v431_v19 = vld [vmem:[%s865_s0 + $0x6] ss:$16 sm:%s102_s8]   ;;  %75 = vrot.lane.b32.xlu0 %v74_v16, %s501_s23  ;;  %v100_v20 = vsel %vm46_vm1, %v430_v18, %v95_v17  ;;  %s134_s23 = smov 3  ;;  %s502_s30 = smov 96   ;;  %v117_v25 = vsel %vm41_vm0, %v433_v23, %v432_v21 }
   0xb   :  { %v105_v22 = vsel %vm51_vm2, %v431_v19, %v100_v20  ;;  %v434_v24 = vld [vmem:[%s865_s0 + $0xe] ss:$16 sm:%s119_s19]   ;;  %s150_s4 = smov 48  ;;  %s155_s5 = smov 192  ;;  %v439_v29 = vld [vmem:[%s865_s0 + $0x5] ss:$16 sm:%s142_s28]  }
   0xc   :  { %106 = vrot.lane.b32.xlu1 %v105_v22, %s502_s30  ;;  %v435_v26 = vld [vmem:[%s865_s0 + $0xe] ss:$16 sm:%s124_s22]   ;;  %v122_v27 = vsel %vm46_vm1, %v434_v24, %v117_v25  ;;  %s164_s10 = smov 3  ;;  %s167_s15 = smov 12 }
   0xd   :  { %v437_v28 = vld [vmem:[%s865_s0 + $0x86] ss:$8 sm:%s134_s23]   ;;  %v127_v30 = vsel %vm51_vm2, %v435_v26, %v122_v27  ;;  %v440_v31 = vld [vmem:[%s865_s0 + $0x5] ss:$16 sm:%s145_s29]   ;;  %s172_s16 = smov 48  ;;  %s177_s19 = smov 192 }
   0xe   :  { %v441_v32 = vld [vmem:[%s865_s0 + $0x5] ss:$16 sm:%s150_s4]   ;;  %128 = vrot.lane.b32.xlu0 %v127_v30, %s502_s30  ;;  %v148_v33 = vsel %vm41_vm0, %v440_v31, %v439_v29  ;;  %s187_s20 = smov 3  ;;  %s195_s23 = smov 3 }
   0xf   :  { %v442_v34 = vld [vmem:[%s865_s0 + $0x5] ss:$16 sm:%s155_s5]   ;;  %v153_v35 = vsel %vm46_vm1, %v441_v32, %v148_v33  ;;  %v443_v36 = vld [vmem:[%s865_s0 + $0xd] ss:$16 sm:%s164_s10]   ;;  %s198_s28 = smov 12  ;;  %s203_s29 = smov 48 }
  0x10   :  { %136 = vrot.lane.b32.xlu1 %v437_v28, %s502_s30  ;;  %v158_v37 = vsel %vm51_vm2, %v442_v34, %v153_v35  ;;  %v444_v38 = vld [vmem:[%s865_s0 + $0xd] ss:$16 sm:%s167_s15]   ;;  %s208_s5 = smov 192  ;;  %s503_s6 = smov 80  }
  0x11   :  { %v445_v39 = vld [vmem:[%s865_s0 + $0xd] ss:$16 sm:%s172_s16]   ;;  %v170_v40 = vsel %vm41_vm0, %v444_v38, %v443_v36  ;;  %v450_v44 = vld [vmem:[%s865_s0 + $0x4] ss:$16 sm:%s195_s23]   ;;  %s217_s9 = smov 3  ;;  %s220_s10 = smov 12 }
  0x12   :  { %v446_v41 = vld [vmem:[%s865_s0 + $0xd] ss:$16 sm:%s177_s19]   ;;  %159 = vrot.lane.b32.xlu0 %v158_v37, %s503_s6  ;;  %v175_v43 = vsel %vm46_vm1, %v445_v39, %v170_v40  ;;  %s225_s15 = smov 48  ;;  %s230_s18 = smov 192 }
  0x13   :  { %v448_v42 = vld [vmem:[%s865_s0 + $0x85] ss:$8 sm:%s187_s20]   ;;  %v180_v45 = vsel %vm51_vm2, %v446_v41, %v175_v43  ;;  %v451_v46 = vld [vmem:[%s865_s0 + $0x4] ss:$16 sm:%s198_s28]   ;;  %s240_s19 = smov 3  ;;  %s248_s24 = smov 3 }
  0x14   :  { %v452_v47 = vld [vmem:[%s865_s0 + $0x4] ss:$16 sm:%s203_s29]   ;;  %181 = vrot.lane.b32.xlu1 %v180_v45, %s503_s6  ;;  %v201_v48 = vsel %vm41_vm0, %v451_v46, %v450_v44  ;;  %s251_s27 = smov 12  ;;  %s256_s28 = smov 48 }
  0x15   :  { %v453_v49 = vld [vmem:[%s865_s0 + $0x4] ss:$16 sm:%s208_s5]   ;;  %v206_v50 = vsel %vm46_vm1, %v452_v47, %v201_v48  ;;  %v454_v51 = vld [vmem:[%s865_s0 + $0xc] ss:$16 sm:%s217_s9]   ;;  %s261_s4 = smov 192  ;;  %s504_s5 = smov 64  }
  0x16   :  { %v455_v52 = vld [vmem:[%s865_s0 + $0xc] ss:$16 sm:%s220_s10]   ;;  %189 = vrot.lane.b32.xlu0 %v448_v42, %s503_s6  ;;  %v211_v53 = vsel %vm51_vm2, %v453_v49, %v206_v50  ;;  %s270_s8 = smov 3  ;;  %s273_s9 = smov 12 }
  0x17   :  { %v223_v54 = vsel %vm41_vm0, %v455_v52, %v454_v51  ;;  %v456_v55 = vld [vmem:[%s865_s0 + $0xc] ss:$16 sm:%s225_s15]   ;;  %v461_v60 = vld [vmem:[%s865_s0 + $0x3] ss:$16 sm:%s248_s24]   ;;  %s278_s14 = smov 48  ;;  %s283_s17 = smov 192 }
  0x18   :  { %v228_v56 = vsel %vm46_vm1, %v456_v55, %v223_v54  ;;  %v457_v57 = vld [vmem:[%s865_s0 + $0xc] ss:$16 sm:%s230_s18]   ;;  %212 = vrot.lane.b32.xlu1 %v211_v53, %s504_s5  ;;  %s293_s18 = smov 3  ;;  %s301_s23 = smov 3 }
  0x19   :  { %v459_v58 = vld [vmem:[%s865_s0 + $0x84] ss:$8 sm:%s240_s19]   ;;  %v233_v59 = vsel %vm51_vm2, %v457_v57, %v228_v56  ;;  %v462_v61 = vld [vmem:[%s865_s0 + $0x3] ss:$16 sm:%s251_s27]   ;;  %s304_s26 = smov 12  ;;  %s309_s27 = smov 48 }
  0x1a   :  { %v463_v62 = vld [vmem:[%s865_s0 + $0x3] ss:$16 sm:%s256_s28]   ;;  %234 = vrot.lane.b32.xlu0 %v233_v59, %s504_s5  ;;  %v254_v63 = vsel %vm41_vm0, %v462_v61, %v461_v60  ;;  %s314_s3 = smov 192  ;;  %s323_s7 = smov 3 }
  0x1b   :  { %v464_v0 = vld [vmem:[%s865_s0 + $0x3] ss:$16 sm:%s261_s4]   ;;  %v259_v1 = vsel %vm46_vm1, %v463_v62, %v254_v63  ;;  %v465_v2 = vld [vmem:[%s865_s0 + $0xb] ss:$16 sm:%s270_s8]   ;;  %s505_s4 = smov 48   ;;  %s326_s8 = smov 12 }
  0x1c   :  { %v466_v3 = vld [vmem:[%s865_s0 + $0xb] ss:$16 sm:%s273_s9]   ;;  %242 = vrot.lane.b32.xlu1 %v459_v58, %s504_s5  ;;  %v264_v4 = vsel %vm51_vm2, %v464_v0, %v259_v1  ;;  %s331_s13 = smov 48  ;;  %s336_s16 = smov 192 }
  0x1d   :  { %v276_v5 = vsel %vm41_vm0, %v466_v3, %v465_v2  ;;  %v467_v6 = vld [vmem:[%s865_s0 + $0xb] ss:$16 sm:%s278_s14]   ;;  %v472_v11 = vld [vmem:[%s865_s0 + $0x2] ss:$16 sm:%s301_s23]   ;;  %s354_s22 = smov 3  ;;  %s357_s25 = smov 12 }
  0x1e   :  { %v281_v7 = vsel %vm46_vm1, %v467_v6, %v276_v5  ;;  %v468_v8 = vld [vmem:[%s865_s0 + $0xb] ss:$16 sm:%s283_s17]   ;;  %265 = vrot.lane.b32.xlu0 %v264_v4, %s505_s4  ;;  %s346_s17 = smov 3  ;;  %s367_s2 = smov 192 }
  0x1f   :  { %v470_v9 = vld [vmem:[%s865_s0 + $0x83] ss:$8 sm:%s293_s18]   ;;  %v286_v10 = vsel %vm51_vm2, %v468_v8, %v281_v7  ;;  %v473_v12 = vld [vmem:[%s865_s0 + $0x2] ss:$16 sm:%s304_s26]   ;;  %s362_s26 = smov 48  ;;  %s384_s14 = smov 48 }
  0x20   :  { %v474_v13 = vld [vmem:[%s865_s0 + $0x2] ss:$16 sm:%s309_s27]   ;;  %287 = vrot.lane.b32.xlu1 %v286_v10, %s505_s4  ;;  %v307_v14 = vsel %vm41_vm0, %v473_v12, %v472_v11  ;;  %v2_v27 = vld [vmem:[%s865_s0] ss:$8 sm:$0xf]   ;;  %s30_s24 = smov 3 }
  0x21   :  { %v475_v15 = vld [vmem:[%s865_s0 + $0x2] ss:$16 sm:%s314_s3]   ;;  %v312_v16 = vsel %vm46_vm1, %v474_v13, %v307_v14  ;;  %v476_v17 = vld [vmem:[%s865_s0 + $0xa] ss:$16 sm:%s323_s7]   ;;  %s376_s3 = smov 3  ;;  %s379_s7 = smov 12 }
  0x22   :  { %v477_v18 = vld [vmem:[%s865_s0 + $0xa] ss:$16 sm:%s326_s8]   ;;  %295 = vrot.lane.b32.xlu0 %v470_v9, %s505_s4  ;;  %v317_v19 = vsel %vm51_vm2, %v475_v15, %v312_v16  ;;  %s506_s4 = smov 32   ;;  %v3_v32 = vld [vmem:[%s865_s0] ss:$8 sm:$0xf0]  }
  0x23   :  { %v329_v20 = vsel %vm41_vm0, %v477_v18, %v476_v17  ;;  %v478_v21 = vld [vmem:[%s865_s0 + $0xa] ss:$16 sm:%s331_s13]   ;;  %v483_v26 = vld [vmem:[%s865_s0 + $0x1] ss:$16 sm:%s354_s22]   ;;  %v5_v36 = vsel %vm4_vm3, %v3_v32, %v2_v27  ;;  %s399_s27 = smov 3  ;;  %s507_s11 = smov 16  }
  0x24   :  { %v334_v22 = vsel %vm46_vm1, %v478_v21, %v329_v20  ;;  %v479_v23 = vld [vmem:[%s865_s0 + $0xa] ss:$16 sm:%s336_s16]   ;;  %318 = vrot.lane.b32.xlu1 %v317_v19, %s506_s4  ;;  %7 = vst.msk [vmem:[%s866_s1] ss:$8 sm:$0x3] %vm6_vm4, %v5_v36  }
  0x25   :  { %v481_v24 = vld [vmem:[%s865_s0 + $0x82] ss:$8 sm:%s346_s17]   ;;  %v339_v25 = vsel %vm51_vm2, %v479_v23, %v334_v22  ;;  %v484_v28 = vld [vmem:[%s865_s0 + $0x1] ss:$16 sm:%s357_s25]   ;;  %s389_s17 = smov 192 }
  0x26   :  { %v485_v29 = vld [vmem:[%s865_s0 + $0x1] ss:$16 sm:%s362_s26]   ;;  %340 = vrot.lane.b32.xlu0 %v339_v25, %s506_s4  ;;  %v360_v30 = vsel %vm41_vm0, %v484_v28, %v483_v26  ;;  %406 = vst.msk [vmem:[%s866_s1 - $0xf] ss:$8 sm:$0xc] %vm6_vm4, %v5_v36  }
  0x27   :  { %v486_v31 = vld [vmem:[%s865_s0 + $0x1] ss:$16 sm:%s367_s2]   ;;  %v365_v33 = vsel %vm46_vm1, %v485_v29, %v360_v30  ;;  %v487_v34 = vld [vmem:[%s865_s0 + $0x9] ss:$16 sm:%s376_s3]  }
  0x28   :  { %v488_v35 = vld [vmem:[%s865_s0 + $0x9] ss:$16 sm:%s379_s7]   ;;  %348 = vrot.lane.b32.xlu1 %v481_v24, %s506_s4  ;;  %v370_v37 = vsel %vm51_vm2, %v486_v31, %v365_v33  ;;  %407 = vst.msk [vmem:[%s866_s1 - $0x1e] ss:$8 sm:$0x30] %vm6_vm4, %v5_v36  }
  0x29   :  { %v382_v38 = vsel %vm41_vm0, %v488_v35, %v487_v34  ;;  %v489_v39 = vld [vmem:[%s865_s0 + $0x9] ss:$16 sm:%s384_s14]   ;;  %408 = vst.msk [vmem:[%s866_s1 - $0x2d] ss:$8 sm:$0xc0] %vm6_vm4, %v5_v36  }
  0x2a   :  { %v409_v40 = vld [vmem:[%s865_s0 + $0x40] ss:$8 sm:$0xf]   ;;  %v387_v41 = vsel %vm46_vm1, %v489_v39, %v382_v38  ;;  %v490_v42 = vld [vmem:[%s865_s0 + $0x9] ss:$16 sm:%s389_s17]   ;;  %371 = vrot.lane.b32.xlu0 %v370_v37, %s507_s11 }
  0x2b   :  { %v392_v43 = vsel %vm51_vm2, %v490_v42, %v387_v41  ;;  %v415_v44 = vld [vmem:[%s865_s0 + $0x80] ss:$8 sm:%s30_s24]   ;;  %v492_v46 = vld [vmem:[%s865_s0 + $0x81] ss:$8 sm:%s399_s27]  }
  0x2c   :  { %v410_v45 = vld [vmem:[%s865_s0 + $0x40] ss:$8 sm:$0xf0]   ;;  %416 = vst.msk [vmem:[%s866_s1 + $0x10] ss:$8 sm:$0x3] %vm6_vm4, %v415_v44   ;;  %393 = vrot.lane.b32.xlu1 %v392_v43, %s507_s11 }
  0x2d   :  { %v19_v47 = vsel %vm4_vm3, %v410_v45, %v409_v40 }
  0x2e   :  { %411 = vst.msk [vmem:[%s866_s1 + $0x4] ss:$8 sm:$0x3] %vm6_vm4, %v19_v47   ;;  %412 = vst.msk [vmem:[%s866_s1 - $0xb] ss:$8 sm:$0xc] %vm6_vm4, %v19_v47   ;;  %401 = vrot.lane.b32.xlu0 %v492_v46, %s507_s11 }
  0x2f   :  { %413 = vst.msk [vmem:[%s866_s1 - $0x1a] ss:$8 sm:$0x30] %vm6_vm4, %v19_v47   ;;  %414 = vst.msk [vmem:[%s866_s1 - $0x29] ss:$8 sm:$0xc0] %vm6_vm4, %v19_v47  }
  0x78   :  { %v84_v48 = vpop.permute.xlu1 %83   ;;  %v54_v49 = vpop.permute.xlu0 %53  }
  0x79   :  { %427 = vst.msk [vmem:[%s866_s1 + $0x10] ss:$8 sm:$0x3] %vm55_vm5, %v84_v48   ;;  %56 = vst.msk [vmem:[%s866_s1] sm:$0xff] %vm55_vm5, %v54_v49  }
  0x7c   :  { %v76_v50 = vpop.permute.xlu0 %75  }
  0x7d   :  { %425 = vst.msk [vmem:[%s866_s1 + $0x8] sm:$0xff] %vm55_vm5, %v76_v50  }
  0x7e   :  { %v107_v51 = vpop.permute.xlu1 %106  }
  0x7f   :  { %109 = vst.msk [vmem:[%s866_s1] sm:$0xff] %vm108_vm6, %v107_v51  }
  0x80   :  { %v129_v52 = vpop.permute.xlu0 %128  }
  0x81   :  { %436 = vst.msk [vmem:[%s866_s1 + $0x8] sm:$0xff] %vm108_vm6, %v129_v52  }
  0x82   :  { %v137_v53 = vpop.permute.xlu1 %136  }
  0x83   :  { %438 = vst.msk [vmem:[%s866_s1 + $0x10] ss:$8 sm:$0x3] %vm108_vm6, %v137_v53  }
  0x84   :  { %v160_v54 = vpop.permute.xlu0 %159  }
  0x85   :  { %162 = vst.msk [vmem:[%s866_s1] sm:$0xff] %vm161_vm7, %v160_v54  }
  0x86   :  { %v182_v55 = vpop.permute.xlu1 %181  }
  0x87   :  { %447 = vst.msk [vmem:[%s866_s1 + $0x8] sm:$0xff] %vm161_vm7, %v182_v55  }
  0x88   :  { %v190_v56 = vpop.permute.xlu0 %189  }
  0x89   :  { %449 = vst.msk [vmem:[%s866_s1 + $0x10] ss:$8 sm:$0x3] %vm161_vm7, %v190_v56  }
  0x8a   :  { %v213_v57 = vpop.permute.xlu1 %212  }
  0x8b   :  { %215 = vst.msk [vmem:[%s866_s1] sm:$0xff] %vm214_vm8, %v213_v57  }
  0x8c   :  { %v235_v58 = vpop.permute.xlu0 %234  }
  0x8d   :  { %458 = vst.msk [vmem:[%s866_s1 + $0x8] sm:$0xff] %vm214_vm8, %v235_v58  }
  0x8e   :  { %v243_v59 = vpop.permute.xlu1 %242  }
  0x8f   :  { %460 = vst.msk [vmem:[%s866_s1 + $0x10] ss:$8 sm:$0x3] %vm214_vm8, %v243_v59  }
  0x90   :  { %v266_v60 = vpop.permute.xlu0 %265  }
  0x91   :  { %268 = vst.msk [vmem:[%s866_s1] sm:$0xff] %vm267_vm9, %v266_v60  }
  0x92   :  { %v288_v61 = vpop.permute.xlu1 %287  }
  0x93   :  { %469 = vst.msk [vmem:[%s866_s1 + $0x8] sm:$0xff] %vm267_vm9, %v288_v61  }
  0x94   :  { %v296_v62 = vpop.permute.xlu0 %295  }
  0x95   :  { %471 = vst.msk [vmem:[%s866_s1 + $0x10] ss:$8 sm:$0x3] %vm267_vm9, %v296_v62  }
  0x96   :  { %v319_v63 = vpop.permute.xlu1 %318  }
  0x97   :  { %321 = vst.msk [vmem:[%s866_s1] sm:$0xff] %vm320_vm10, %v319_v63  }
  0x98   :  { %v341_v0 = vpop.permute.xlu0 %340  }
  0x99   :  { %480 = vst.msk [vmem:[%s866_s1 + $0x8] sm:$0xff] %vm320_vm10, %v341_v0  }
  0x9a   :  { %v349_v1 = vpop.permute.xlu1 %348  }
  0x9b   :  { %482 = vst.msk [vmem:[%s866_s1 + $0x10] ss:$8 sm:$0x3] %vm320_vm10, %v349_v1  }
  0x9c   :  { %v372_v2 = vpop.permute.xlu0 %371  }
  0x9d   :  { %374 = vst.msk [vmem:[%s866_s1] sm:$0xff] %vm373_vm11, %v372_v2  }
  0x9e   :  { %v394_v3 = vpop.permute.xlu1 %393  }
  0x9f   :  { %491 = vst.msk [vmem:[%s866_s1 + $0x8] sm:$0xff] %vm373_vm11, %v394_v3  }
  0xa0   :  { %v402_v4 = vpop.permute.xlu0 %401  }
  0xa1   :  { %493 = vst.msk [vmem:[%s866_s1 + $0x10] ss:$8 sm:$0x3] %vm373_vm11, %v402_v4  }

// kernel: tile.42
= control target key start
LH: loop header
LB: loop body
LE: loop exit
PB: predicated region body
PF: predicated region fallthrough
CT: control target
= control target key end

     0   :  { %s7_s6 = smov 3  ;;  %s21_s9 = smov 3  ;;  %vm4_vm0 = vcmask 130048   ;;  %vm11_vm1 = vcmask 1048448   ;;  %vm18_vm2 = vcmask 917248   ;;  %vm25_vm3 = vcmask 786048   ;;  %s131_s0 = inlined_call_operand.vmem [shape: f32[16,16], index: 0, kind: input, shape index: {}]   ;;  %s132_s1 = inlined_call_operand.vmem [shape: f32[1,256], index: 1, kind: output, shape index: {}]  }
   0x1   :  { %v69_v0 = vld [vmem:[%s131_s0 + $0x7] ss:$8 sm:%s7_s6]   ;;  %s84_s10 = smov 112   ;;  %v71_v1 = vld [vmem:[%s131_s0 + $0x5] ss:$8 sm:%s21_s9]   ;;  %s14_s13 = smov 3 }
   0x2   :  { %9 = vrot.lane.b32.xlu0 %v69_v0, %s84_s10  ;;  %s85_s14 = smov 80   ;;  %v70_v2 = vld [vmem:[%s131_s0 + $0x6] ss:$8 sm:%s14_s13]   ;;  %s28_s17 = smov 3  ;;  %vm32_vm4 = vcmask 654848   ;;  %vm39_vm5 = vcmask 523648  }
   0x3   :  { %23 = vrot.lane.b32.xlu1 %v71_v1, %s85_s14  ;;  %v72_v3 = vld [vmem:[%s131_s0 + $0x4] ss:$8 sm:%s28_s17]   ;;  %s35_s20 = smov 3  ;;  %s42_s21 = smov 3  ;;  %vm46_vm6 = vcmask 392448   ;;  %vm53_vm7 = vcmask 261248  }
   0x4   :  { %s86_s22 = smov 96   ;;  %s87_s23 = smov 64   ;;  %v73_v4 = vld [vmem:[%s131_s0 + $0x3] ss:$8 sm:%s35_s20]   ;;  %v74_v5 = vld [vmem:[%s131_s0 + $0x2] ss:$8 sm:%s42_s21]  }
   0x5   :  { %s2_s26 = smov 3  ;;  %s49_s29 = smov 3 }
   0x6   :  { %16 = vrot.lane.b32.xlu0 %v70_v2, %s86_s22  ;;  %v3_v6 = vld [vmem:[%s131_s0] ss:$8 sm:%s2_s26]   ;;  %s88_s3 = smov 48   ;;  %s89_s4 = smov 32  }
   0x7   :  { %30 = vrot.lane.b32.xlu1 %v72_v3, %s87_s23  ;;  %5 = vst.msk [vmem:[#allocation0] ss:$8 sm:$0x3] %vm4_vm0, %v3_v6   ;;  %v75_v7 = vld [vmem:[%s131_s0 + $0x1] ss:$8 sm:%s49_s29]   ;;  %s90_s0 = smov 16  }
   0xa   :  { %37 = vrot.lane.b32.xlu0 %v73_v4, %s88_s3 }
   0xb   :  { %44 = vrot.lane.b32.xlu1 %v74_v5, %s89_s4 }
   0xe   :  { %51 = vrot.lane.b32.xlu0 %v75_v7, %s90_s0 }
  0x74   :  { %v10_v8 = vpop.permute.xlu0 %9  }
  0x75   :  { %12 = vst.msk [vmem:[#allocation0] ss:$8 sm:$0x3] %vm11_vm1, %v10_v8   ;;  %v24_v9 = vpop.permute.xlu1 %23  }
  0x78   :  { %v17_v10 = vpop.permute.xlu0 %16  }
  0x79   :  { %19 = vst.msk [vmem:[#allocation0] ss:$8 sm:$0x3] %vm18_vm2, %v17_v10   ;;  %v31_v11 = vpop.permute.xlu1 %30  }
  0x7a   :  { %26 = vst.msk [vmem:[#allocation0] ss:$8 sm:$0x3] %vm25_vm3, %v24_v9  }
  0x7b   :  { %33 = vst.msk [vmem:[#allocation0] ss:$8 sm:$0x3] %vm32_vm4, %v31_v11  }
  0x7c   :  { %v38_v12 = vpop.permute.xlu0 %37  }
  0x7d   :  { %40 = vst.msk [vmem:[#allocation0] ss:$8 sm:$0x3] %vm39_vm5, %v38_v12   ;;  %v45_v13 = vpop.permute.xlu1 %44  }
  0x7e   :  { %47 = vst.msk [vmem:[#allocation0] ss:$8 sm:$0x3] %vm46_vm6, %v45_v13  }
  0x80   :  { %v52_v14 = vpop.permute.xlu0 %51  }
  0x81   :  { %54 = vst.msk [vmem:[#allocation0] ss:$8 sm:$0x3] %vm53_vm7, %v52_v14  }
  0x88   :  { %v59_v15 = vld [vmem:[#allocation0] sm:$0x1]  ;;  %v64_v16 = vld [vmem:[#allocation0 + $0x8] sm:$0x1] }
  0x89   :  { %62 = vst [vmem:[%s132_s1] sm:$0x1] %v59_v15  ;;  %76 = vst [vmem:[%s132_s1 + $0x1] sm:$0x1] %v64_v16 }

// kernel: tile.47
= control target key start
LH: loop header
LB: loop body
LE: loop exit
PB: predicated region body
PF: predicated region fallthrough
CT: control target
= control target key end

     0   :  { %s133_s10 = smov 120   ;;  %s134_s11 = smov 104   ;;  %vm3_vm0 = vcmask 64512   ;;  %vm9_vm1 = vcmask 1048512   ;;  %vm15_vm2 = vcmask 982912   ;;  %vm21_vm3 = vcmask 917312   ;;  %s209_s0 = inlined_call_operand.vmem [shape: f32[16,8], index: 0, kind: input, shape index: {}]   ;;  %s210_s1 = inlined_call_operand.vmem [shape: f32[1,128], index: 1, kind: output, shape index: {}]  }
   0x1   :  { %v103_v0 = vld [vmem:[%s209_s0 + $0xf] sm:$0x1]   ;;  %v105_v1 = vld [vmem:[%s209_s0 + $0xd] sm:$0x1]   ;;  %v104_v2 = vld [vmem:[%s209_s0 + $0xe] sm:$0x1]  }
   0x2   :  { %7 = vrot.lane.b32.xlu0 %v103_v0, %s133_s10  ;;  %19 = vrot.lane.b32.xlu1 %v105_v1, %s134_s11  ;;  %v106_v3 = vld [vmem:[%s209_s0 + $0xc] sm:$0x1]   ;;  %s135_s16 = smov 112   ;;  %s136_s17 = smov 96   ;;  %v107_v4 = vld [vmem:[%s209_s0 + $0xb] sm:$0x1]  }
   0x3   :  { %v108_v5 = vld [vmem:[%s209_s0 + $0xa] sm:$0x1]   ;;  %v2_v6 = vld [vmem:[%s209_s0] sm:$0x1]   ;;  %s137_s24 = smov 88   ;;  %s138_s25 = smov 80  }
   0x4   :  { %4 = vst.msk [vmem:[#allocation0] sm:$0x1] %vm3_vm0, %v2_v6   ;;  %v109_v7 = vld [vmem:[%s209_s0 + $0x9] sm:$0x1]   ;;  %v110_v8 = vld [vmem:[%s209_s0 + $0x8] sm:$0x1]  }
   0x5   :  { %s139_s30 = smov 72   ;;  %s140_s2 = smov 64   ;;  %v111_v9 = vld [vmem:[%s209_s0 + $0x7] sm:$0x1]   ;;  %v112_v10 = vld [vmem:[%s209_s0 + $0x6] sm:$0x1]  }
   0x6   :  { %13 = vrot.lane.b32.xlu0 %v104_v2, %s135_s16  ;;  %25 = vrot.lane.b32.xlu1 %v106_v3, %s136_s17  ;;  %s141_s7 = smov 56   ;;  %s142_s8 = smov 48   ;;  %v113_v11 = vld [vmem:[%s209_s0 + $0x5] sm:$0x1]   ;;  %v114_v12 = vld [vmem:[%s209_s0 + $0x4] sm:$0x1]  }
   0x7   :  { %s143_s13 = smov 40   ;;  %s144_s14 = smov 32   ;;  %v115_v13 = vld [vmem:[%s209_s0 + $0x3] sm:$0x1]   ;;  %v116_v14 = vld [vmem:[%s209_s0 + $0x2] sm:$0x1]  }
   0x8   :  { %s145_s19 = smov 24   ;;  %s146_s20 = smov 16   ;;  %v117_v15 = vld [vmem:[%s209_s0 + $0x1] sm:$0x1]   ;;  %vm27_vm4 = vcmask 851712   ;;  %vm33_vm5 = vcmask 786112  }
   0x9   :  { %s147_s0 = smov 8   ;;  %vm39_vm6 = vcmask 720512   ;;  %vm45_vm7 = vcmask 654912   ;;  %vm51_vm8 = vcmask 589312   ;;  %vm57_vm9 = vcmask 523712  }
   0xa   :  { %31 = vrot.lane.b32.xlu0 %v107_v4, %s137_s24  ;;  %37 = vrot.lane.b32.xlu1 %v108_v5, %s138_s25  ;;  %vm63_vm10 = vcmask 458112   ;;  %vm69_vm11 = vcmask 392512   ;;  %vm75_vm12 = vcmask 326912   ;;  %vm81_vm13 = vcmask 261312  }
   0xb   :  { %vm87_vm14 = vcmask 195712   ;;  %vm93_vm15 = vcmask 130112  }
   0xe   :  { %43 = vrot.lane.b32.xlu0 %v109_v7, %s139_s30  ;;  %49 = vrot.lane.b32.xlu1 %v110_v8, %s140_s2 }
  0x12   :  { %55 = vrot.lane.b32.xlu0 %v111_v9, %s141_s7  ;;  %61 = vrot.lane.b32.xlu1 %v112_v10, %s142_s8 }
  0x16   :  { %67 = vrot.lane.b32.xlu0 %v113_v11, %s143_s13  ;;  %73 = vrot.lane.b32.xlu1 %v114_v12, %s144_s14 }
  0x1a   :  { %79 = vrot.lane.b32.xlu0 %v115_v13, %s145_s19  ;;  %85 = vrot.lane.b32.xlu1 %v116_v14, %s146_s20 }
  0x1e   :  { %91 = vrot.lane.b32.xlu0 %v117_v15, %s147_s0 }
  0x74   :  { %v8_v16 = vpop.permute.xlu0 %7   ;;  %v20_v17 = vpop.permute.xlu1 %19  }
  0x75   :  { %10 = vst.msk [vmem:[#allocation0] sm:$0x1] %vm9_vm1, %v8_v16  }
  0x78   :  { %v14_v18 = vpop.permute.xlu0 %13   ;;  %v26_v19 = vpop.permute.xlu1 %25  }
  0x79   :  { %16 = vst.msk [vmem:[#allocation0] sm:$0x1] %vm15_vm2, %v14_v18  }
  0x7a   :  { %22 = vst.msk [vmem:[#allocation0] sm:$0x1] %vm21_vm3, %v20_v17  }
  0x7b   :  { %28 = vst.msk [vmem:[#allocation0] sm:$0x1] %vm27_vm4, %v26_v19  }
  0x7c   :  { %v32_v20 = vpop.permute.xlu0 %31   ;;  %v38_v21 = vpop.permute.xlu1 %37  }
  0x7d   :  { %34 = vst.msk [vmem:[#allocation0] sm:$0x1] %vm33_vm5, %v32_v20  }
  0x7e   :  { %40 = vst.msk [vmem:[#allocation0] sm:$0x1] %vm39_vm6, %v38_v21  }
  0x80   :  { %v44_v22 = vpop.permute.xlu0 %43   ;;  %v50_v23 = vpop.permute.xlu1 %49  }
  0x81   :  { %46 = vst.msk [vmem:[#allocation0] sm:$0x1] %vm45_vm7, %v44_v22  }
  0x82   :  { %52 = vst.msk [vmem:[#allocation0] sm:$0x1] %vm51_vm8, %v50_v23  }
  0x84   :  { %v56_v24 = vpop.permute.xlu0 %55   ;;  %v62_v25 = vpop.permute.xlu1 %61  }
  0x85   :  { %58 = vst.msk [vmem:[#allocation0] sm:$0x1] %vm57_vm9, %v56_v24  }
  0x86   :  { %64 = vst.msk [vmem:[#allocation0] sm:$0x1] %vm63_vm10, %v62_v25  }
  0x88   :  { %v68_v26 = vpop.permute.xlu0 %67   ;;  %v74_v27 = vpop.permute.xlu1 %73  }
  0x89   :  { %70 = vst.msk [vmem:[#allocation0] sm:$0x1] %vm69_vm11, %v68_v26  }
  0x8a   :  { %76 = vst.msk [vmem:[#allocation0] sm:$0x1] %vm75_vm12, %v74_v27  }
  0x8c   :  { %v80_v28 = vpop.permute.xlu0 %79   ;;  %v86_v29 = vpop.permute.xlu1 %85  }
  0x8d   :  { %82 = vst.msk [vmem:[#allocation0] sm:$0x1] %vm81_vm13, %v80_v28  }
  0x8e   :  { %88 = vst.msk [vmem:[#allocation0] sm:$0x1] %vm87_vm14, %v86_v29  }
  0x90   :  { %v92_v30 = vpop.permute.xlu0 %91  }
  0x91   :  { %94 = vst.msk [vmem:[#allocation0] sm:$0x1] %vm93_vm15, %v92_v30  }
  0x98   :  { %v99_v31 = vld [vmem:[#allocation0] sm:$0x1] }
  0x99   :  { %102 = vst [vmem:[%s210_s1] sm:$0x1] %v99_v31 }

// kernel: bottleneck_forward.1
= control target key start
LH: loop header
LB: loop body
LE: loop exit
PB: predicated region body
PF: predicated region fallthrough
CT: control target
= control target key end

     0   :  { %v2072_v3 = vmov 0.0   ;;  %vm129_vm0 = vcmask 523264   ;;  %v94_v61 = vlaneseq  ;;  %vm679_vm1 = vcmask 261120   ;;  %s2062_s1 = inlined_call_operand.vmem [shape: f32[64,896], index: 1, kind: input, shape index: {}]   ;;  %s2063_s0 = inlined_call_operand.vmem [shape: f32[32,64], index: 0, kind: input, shape index: {}]   ;;  %s2064_s2 = inlined_call_operand.vmem [shape: f32[1,896], index: 2, kind: input, shape index: {}]   ;;  %s2065_s3 = inlined_call_operand.vmem [shape: f32[9,256], index: 3, kind: input, shape index: {}]   ;;  %s2066_s7 = inlined_call_operand.vmem [shape: f32[32,32], index: 7, kind: input, shape index: {}]   ;;  %s2067_s8 = inlined_call_operand.vmem [shape: f32[32,32], index: 8, kind: input, shape index: {}]   ;;  %s2068_s5 = inlined_call_operand.vmem [shape: f32[256,128], index: 5, kind: input, shape index: {}]   ;;  %s2069_s4 = inlined_call_operand.vmem [shape: f32[1,256], index: 4, kind: input, shape index: {}]   ;;  %s2070_s6 = inlined_call_operand.vmem [shape: f32[1,128], index: 6, kind: input, shape index: {}]   ;;  %s2071_s9 = inlined_call_operand.vmem [shape: f32[32,128], index: 9, kind: output, shape index: {}]  }
   0x1   :  { %v86_v0 = vld [vmem:[%s2062_s1 + $0x190] sm:$0xff]  ;;  %v85_v1 = vld [vmem:[%s2062_s1 + $0x188] sm:$0xff]  ;;  %v79_v2 = vld [vmem:[%s2062_s1 + $0x158] sm:$0xff]  ;;  %206 = vmatprep.mubr.f32.mxu0 %v2072_v3 }
   0x2   :  { %158 = vmatprep.subr.mxu0 %v86_v0  ;;  %v78_v4 = vld [vmem:[%s2062_s1 + $0x150] sm:$0xff]  ;;  %v72_v5 = vld [vmem:[%s2062_s1 + $0x120] sm:$0xff]  ;;  %v71_v6 = vld [vmem:[%s2062_s1 + $0x118] sm:$0xff]  ;;  %v1542_v62 = vshrl.u32 %v94_v61, 7 }
   0x3   :  { %159 = vmatpush1.msra.mxu0 %v85_v1  ;;  %v65_v7 = vld [vmem:[%s2062_s1 + $0xe8] sm:$0xff]  ;;  %v64_v8 = vld [vmem:[%s2062_s1 + $0xe0] sm:$0xff]  ;;  %v58_v10 = vld [vmem:[%s2062_s1 + $0xb0] sm:$0xff] }
   0x4   :  { %160 = vmatprep.subr.mxu0 %v79_v2  ;;  %v1336_v9 = vld [vmem:[%s2063_s0] sm:$0xff]  ;;  %v57_v11 = vld [vmem:[%s2062_s1 + $0xa8] sm:$0xff]  ;;  %v51_v12 = vld [vmem:[%s2062_s1 + $0x78] sm:$0xff]  ;;  %2077 = vst [vmem:[#allocation2_spill] sm:$0xff] %v1542_v62  ;;  %v1545_v63 = vsub.s32 0, %v1542_v62  ;;  %v1553_v1 = vsub.s32 1, %v1542_v62 }
   0x5   :  { %161 = vmatpush1.msra.mxu0 %v78_v4  ;;  %1250 = vmatprep.mubr.msk.f32.mxu1 %vm129_vm0, %v1336_v9  ;;  %v50_v13 = vld [vmem:[%s2062_s1 + $0x70] sm:$0xff]  ;;  %v44_v14 = vld [vmem:[%s2062_s1 + $0x40] sm:$0xff]  ;;  %v43_v15 = vld [vmem:[%s2062_s1 + $0x38] sm:$0xff] }
   0x6   :  { %162 = vmatprep.subr.mxu0 %v72_v5  ;;  %v37_v16 = vld [vmem:[%s2062_s1 + $0x8] sm:$0xff]  ;;  %v36_v17 = vld [vmem:[%s2062_s1] sm:$0xff]  ;;  %v87_v19 = vld [vmem:[%s2062_s1 + $0x198] sm:$0xff]  ;;  %2079 = vst [vmem:[#allocation4_spill] sm:$0xff] %v1553_v1 }
   0x7   :  { %163 = vmatpush1.msra.mxu0 %v71_v6  ;;  %v88_v18 = vld [vmem:[%s2062_s1 + $0x1a0] sm:$0xff]  ;;  %v81_v20 = vld [vmem:[%s2062_s1 + $0x168] sm:$0xff]  ;;  %v74_v23 = vld [vmem:[%s2062_s1 + $0x130] sm:$0xff] }
   0x8   :  { %164 = vmatprep.subr.mxu0 %v65_v7  ;;  %v80_v21 = vld [vmem:[%s2062_s1 + $0x160] sm:$0xff]  ;;  %v1382_v22 = vld [vmem:[%s2063_s0 + $0x8] sm:$0xff]  ;;  %v67_v25 = vld [vmem:[%s2062_s1 + $0xf8] sm:$0xff] }
   0x9   :  { %165 = vmatpush1.msra.mxu0 %v64_v8  ;;  %v73_v24 = vld [vmem:[%s2062_s1 + $0x128] sm:$0xff]  ;;  %v66_v26 = vld [vmem:[%s2062_s1 + $0xf0] sm:$0xff]  ;;  %v60_v28 = vld [vmem:[%s2062_s1 + $0xc0] sm:$0xff] }
   0xa   :  { %166 = vmatprep.subr.mxu0 %v58_v10  ;;  %v1402_v27 = vld [vmem:[%s2063_s0 + $0x10] sm:$0xff]  ;;  %v59_v29 = vld [vmem:[%s2062_s1 + $0xb8] sm:$0xff]  ;;  %v53_v30 = vld [vmem:[%s2062_s1 + $0x88] sm:$0xff] }
   0xb   :  { %167 = vmatpush1.msra.mxu0 %v57_v11  ;;  %v52_v31 = vld [vmem:[%s2062_s1 + $0x80] sm:$0xff]  ;;  %v1422_v32 = vld [vmem:[%s2063_s0 + $0x18] sm:$0xff]  ;;  %v46_v33 = vld [vmem:[%s2062_s1 + $0x50] sm:$0xff] }
   0xc   :  { %168 = vmatprep.subr.mxu0 %v51_v12  ;;  %v45_v34 = vld [vmem:[%s2062_s1 + $0x48] sm:$0xff]  ;;  %v39_v35 = vld [vmem:[%s2062_s1 + $0x18] sm:$0xff]  ;;  %v38_v36 = vld [vmem:[%s2062_s1 + $0x10] sm:$0xff] }
   0xd   :  { %169 = vmatpush1.msra.mxu0 %v50_v13  ;;  %v90_v37 = vld [vmem:[%s2062_s1 + $0x1b0] sm:$0xff]  ;;  %v89_v38 = vld [vmem:[%s2062_s1 + $0x1a8] sm:$0xff]  ;;  %v83_v39 = vld [vmem:[%s2062_s1 + $0x178] sm:$0xff] }
   0xe   :  { %170 = vmatprep.subr.mxu0 %v44_v14  ;;  %v82_v40 = vld [vmem:[%s2062_s1 + $0x170] sm:$0xff]  ;;  %v76_v41 = vld [vmem:[%s2062_s1 + $0x140] sm:$0xff]  ;;  %v75_v42 = vld [vmem:[%s2062_s1 + $0x138] sm:$0xff] }
   0xf   :  { %171 = vmatpush1.msra.mxu0 %v43_v15  ;;  %v69_v43 = vld [vmem:[%s2062_s1 + $0x108] sm:$0xff]  ;;  %v68_v44 = vld [vmem:[%s2062_s1 + $0x100] sm:$0xff]  ;;  %v62_v45 = vld [vmem:[%s2062_s1 + $0xd0] sm:$0xff] }
  0x10   :  { %172 = vmatprep.subr.mxu0 %v37_v16  ;;  %v61_v46 = vld [vmem:[%s2062_s1 + $0xc8] sm:$0xff]  ;;  %v55_v47 = vld [vmem:[%s2062_s1 + $0x98] sm:$0xff]  ;;  %v54_v48 = vld [vmem:[%s2062_s1 + $0x90] sm:$0xff] }
  0x11   :  { %173 = vmatpush1.msra.mxu0 %v36_v17  ;;  %v48_v49 = vld [vmem:[%s2062_s1 + $0x60] sm:$0xff]  ;;  %v47_v50 = vld [vmem:[%s2062_s1 + $0x58] sm:$0xff]  ;;  %v41_v51 = vld [vmem:[%s2062_s1 + $0x28] sm:$0xff] }
  0x12   :  { %1145 = vmatmul.mubr.msk.f32.vlgmr.msra.gmra.mxu0 %vm129_vm0, %v1336_v9  ;;  %247 = vmatprep.subr.mxu0 %v88_v18  ;;  %v40_v52 = vld [vmem:[%s2062_s1 + $0x20] sm:$0xff]  ;;  %v91_v53 = vld [vmem:[%s2062_s1 + $0x1b8] sm:$0xff]  ;;  %v77_v55 = vld [vmem:[%s2062_s1 + $0x148] sm:$0xff] }
  0x13   :  { %248 = vmatpush1.msra.mxu0 %v87_v19  ;;  %212 = vmatprep.mubr.f32.mxu0 %v2072_v3  ;;  %v84_v54 = vld [vmem:[%s2062_s1 + $0x180] sm:$0xff]  ;;  %v70_v56 = vld [vmem:[%s2062_s1 + $0x110] sm:$0xff]  ;;  %v63_v57 = vld [vmem:[%s2062_s1 + $0xd8] sm:$0xff] }
  0x14   :  { %249 = vmatprep.subr.mxu0 %v81_v20  ;;  %1234 = vmatprep.subr.mxu1 %v91_v53  ;;  %v56_v58 = vld [vmem:[%s2062_s1 + $0xa0] sm:$0xff]  ;;  %v49_v59 = vld [vmem:[%s2062_s1 + $0x68] sm:$0xff]  ;;  %v42_v60 = vld [vmem:[%s2062_s1 + $0x30] sm:$0xff] }
  0x15   :  { %250 = vmatpush1.msra.mxu0 %v80_v21  ;;  %1235 = vmatpush3.msra.mxu1 %v91_v53  ;;  %v1550_v0 = vld [vmem:[%s2064_s2] sm:$0xff]  ;;  %v112_v53 = vsub.s32 4, %v1542_v62 }
  0x16   :  { %1146 = vmatmul.mubr.msk.f32.gmra.mxu0 %vm129_vm0, %v1382_v22  ;;  %251 = vmatprep.subr.mxu0 %v74_v23  ;;  %2078 = vst [vmem:[#allocation3_spill] sm:$0xff] %v1550_v0  ;;  %v97_v2 = vrot.slane %v1550_v0, %v1545_v63  ;;  %v1164_v4 = vld [vmem:[%s2065_s3 + $0x4] ss:$8 sm:$0x3]  ;;  %v101_v5 = vrot.slane %v1550_v0, %v1553_v1 }
  0x17   :  { %252 = vmatpush1.msra.mxu0 %v73_v24  ;;  %218 = vmatprep.mubr.f32.mxu0 %v2072_v3  ;;  %v627_v8 = vrot.slane %v1164_v4, %v1545_v63  ;;  %v631_v12 = vrot.slane %v1164_v4, %v1553_v1 }
  0x18   :  { %253 = vmatprep.subr.mxu0 %v67_v25  ;;  %1236 = vmatprep.subr.mxu1 %v84_v54 }
  0x19   :  { %254 = vmatpush1.msra.mxu0 %v66_v26  ;;  %1237 = vmatpush3.msra.mxu1 %v84_v54  ;;  %v104_v26 = vsub.s32 2, %v1542_v62  ;;  %v116_v54 = vsub.s32 5, %v1542_v62 }
  0x1a   :  { %1147 = vmatmul.mubr.msk.f32.gmra.mxu0 %vm129_vm0, %v1402_v27  ;;  %255 = vmatprep.subr.mxu0 %v60_v28 }
  0x1b   :  { %256 = vmatpush1.msra.mxu0 %v59_v29  ;;  %224 = vmatprep.mubr.f32.mxu0 %v2072_v3  ;;  %v108_v29 = vsub.s32 3, %v1542_v62 }
  0x1c   :  { %257 = vmatprep.subr.mxu0 %v53_v30  ;;  %1238 = vmatprep.subr.mxu1 %v77_v55 }
  0x1d   :  { %258 = vmatpush1.msra.mxu0 %v52_v31  ;;  %1239 = vmatpush3.msra.mxu1 %v77_v55 }
  0x1e   :  { %1148 = vmatmul.mubr.msk.f32.gmra.mxu0 %vm129_vm0, %v1422_v32  ;;  %259 = vmatprep.subr.mxu0 %v46_v33 }
  0x1f   :  { %260 = vmatpush1.msra.mxu0 %v45_v34  ;;  %295 = vmatprep.mubr.f32.mxu0 %v2072_v3  ;;  %v1161_v34 = vld [vmem:[%s2065_s3 + $0x1] ss:$8 sm:$0x3] }
  0x20   :  { %261 = vmatprep.subr.mxu0 %v39_v35  ;;  %1240 = vmatprep.subr.mxu1 %v70_v56 }
  0x21   :  { %262 = vmatpush1.msra.mxu0 %v38_v36  ;;  %1241 = vmatpush3.msra.mxu1 %v70_v56 }
  0x22   :  { %1149 = vmatmul.mubr.msk.f32.vlgmr.msra.gmra.mxu0 %vm129_vm0, %v1336_v9  ;;  %336 = vmatprep.subr.mxu0 %v90_v37  ;;  %v1597_v37 = vrot.slane %v1550_v0, %v104_v26 }
  0x23   :  { %337 = vmatpush1.msra.mxu0 %v89_v38  ;;  %301 = vmatprep.mubr.f32.mxu0 %v2072_v3 }
  0x24   :  { %338 = vmatprep.subr.mxu0 %v83_v39  ;;  %1242 = vmatprep.subr.mxu1 %v63_v57 }
  0x25   :  { %339 = vmatpush1.msra.mxu0 %v82_v40  ;;  %1243 = vmatpush3.msra.mxu1 %v63_v57  ;;  %v1163_v40 = vld [vmem:[%s2065_s3 + $0x3] ss:$8 sm:$0x3] }
  0x26   :  { %1150 = vmatmul.mubr.msk.f32.gmra.mxu0 %vm129_vm0, %v1382_v22  ;;  %340 = vmatprep.subr.mxu0 %v76_v41  ;;  %v1605_v41 = vrot.slane %v1550_v0, %v108_v29 }
  0x27   :  { %341 = vmatpush1.msra.mxu0 %v75_v42  ;;  %307 = vmatprep.mubr.f32.mxu0 %v2072_v3  ;;  %v1171_v42 = vld [vmem:[%s2065_s3 + $0x7] ss:$8 sm:$0x3] }
  0x28   :  { %342 = vmatprep.subr.mxu0 %v69_v43  ;;  %1244 = vmatprep.subr.mxu1 %v56_v58  ;;  %v1634_v55 = vrot.slane %v1171_v42, %v1545_v63  ;;  %v1650_v61 = vrot.slane %v1171_v42, %v1553_v1 }
  0x29   :  { %343 = vmatpush1.msra.mxu0 %v68_v44  ;;  %1245 = vmatpush3.msra.mxu1 %v56_v58  ;;  %v1641_v58 = vrot.slane %v1163_v40, %v1553_v1 }
  0x2a   :  { %1151 = vmatmul.mubr.msk.f32.gmra.mxu0 %vm129_vm0, %v1402_v27  ;;  %344 = vmatprep.subr.mxu0 %v62_v45  ;;  %v1614_v45 = vrot.slane %v1161_v34, %v1545_v63 }
  0x2b   :  { %345 = vmatpush1.msra.mxu0 %v61_v46  ;;  %313 = vmatprep.mubr.f32.mxu0 %v2072_v3 }
  0x2c   :  { %346 = vmatprep.subr.mxu0 %v55_v47  ;;  %1246 = vmatprep.subr.mxu1 %v49_v59 }
  0x2d   :  { %347 = vmatpush1.msra.mxu0 %v54_v48  ;;  %1247 = vmatpush3.msra.mxu1 %v49_v59  ;;  %v522_v48 = vld [vmem:[%s2065_s3] ss:$8 sm:$0x3]  ;;  %v1162_v59 = vld [vmem:[%s2065_s3 + $0x2] ss:$8 sm:$0x3] }
  0x2e   :  { %1152 = vmatmul.mubr.msk.f32.gmra.mxu0 %vm129_vm0, %v1422_v32  ;;  %348 = vmatprep.subr.mxu0 %v48_v49  ;;  %v1655_v4 = vrot.slane %v522_v48, %v1545_v63  ;;  %v1686_v26 = vrot.slane %v1162_v59, %v1545_v63 }
  0x2f   :  { %349 = vmatpush1.msra.mxu0 %v47_v50  ;;  %384 = vmatprep.mubr.f32.mxu0 %v2072_v3  ;;  %v1626_v50 = vrot.slane %v1163_v40, %v1545_v63 }
  0x30   :  { %350 = vmatprep.subr.mxu0 %v41_v51  ;;  %1248 = vmatprep.subr.mxu1 %v42_v60  ;;  %v1170_v51 = vld [vmem:[%s2065_s3 + $0x6] ss:$8 sm:$0x3] }
  0x31   :  { %351 = vmatpush1.msra.mxu0 %v40_v52  ;;  %1249 = vmatpush3.msra.mxu1 %v42_v60  ;;  %v1647_v60 = vrot.slane %v1161_v34, %v1553_v1 }
  0x32   :  { %1153 = vmatmul.mubr.msk.f32.vlgmr.msra.gmra.mxu0 %vm129_vm0, %v1336_v9  ;;  %1251 = vmatmul.mubr.msk.f32.vlgmr.msra.gmra.mxu1 %vm129_vm0, %v1382_v22 }
  0x33   :  { %390 = vmatprep.mubr.f32.mxu0 %v2072_v3  ;;  %1253 = vmatprep.mubr.msk.f32.mxu1 %vm129_vm0, %v1402_v27 }
  0x36   :  { %1154 = vmatmul.mubr.msk.f32.gmra.mxu0 %vm129_vm0, %v1382_v22  ;;  %1254 = vmatmul.mubr.msk.f32.gmra.mxu1 %vm129_vm0, %v1422_v32 }
  0x37   :  { %396 = vmatprep.mubr.f32.mxu0 %v2072_v3  ;;  %756 = vmatprep.mubr.f32.mxu1 %v2072_v3 }
  0x3a   :  { %1155 = vmatmul.mubr.msk.f32.gmra.mxu0 %vm129_vm0, %v1402_v27 }
  0x3b   :  { %402 = vmatprep.mubr.f32.mxu0 %v2072_v3 }
  0x3e   :  { %1156 = vmatmul.mubr.msk.f32.gmra.mxu0 %vm129_vm0, %v1422_v32 }
  0x3f   :  { %940 = vmatprep.mubr.f32.mxu0 %v2072_v3 }
  0xd2   :  { %v208_v6 = vpop.f32.mrf.mxu0 }
  0xd3   :  { %v209_v7 = vadd.f32 %v208_v6, %v97_v2  ;;  %v1172_v6 = vld [vmem:[%s2065_s3 + $0x10] ss:$8 sm:$0x3] }
  0xd4   :  { %v210_v9 = vpop.f32.mrf.mxu0  ;;  %v1689_v29 = vrot.slane %v1172_v6, %v1545_v63  ;;  %v1704_v42 = vrot.slane %v1172_v6, %v1553_v1 }
  0xd5   :  { %v1563_v10 = vmax.f32 %v209_v7, 0.0  ;;  %v211_v11 = vadd.f32 %v210_v9, %v101_v5  ;;  %v1661_v7 = vrot.slane %v1170_v51, %v1545_v63  ;;  %v1666_v9 = vrot.slane %v522_v48, %v1553_v1 }
  0xd6   :  { %v214_v13 = vpop.f32.mrf.mxu0 }
  0xd7   :  { %v1567_v14 = vmul.f32 %v627_v8, %v1563_v10  ;;  %v1569_v15 = vmax.f32 %v211_v11, 0.0  ;;  %v215_v16 = vadd.f32 %v214_v13, %v97_v2  ;;  %v555_v48 = vmul.f32 %v1614_v45, %v1563_v10 }
  0xd8   :  { %v216_v17 = vpop.f32.mrf.mxu0 }
  0xd9   :  { %v1572_v18 = vmul.f32 %v631_v12, %v1569_v15  ;;  %v217_v19 = vadd.f32 %v216_v17, %v101_v5  ;;  %v1574_v20 = vmax.f32 %v215_v16, 0.0  ;;  %v1675_v16 = vrot.slane %v1170_v51, %v1553_v1 }
  0xda   :  { %v220_v21 = vpop.f32.mrf.mxu0 }
  0xdb   :  { %v1576_v22 = vmax.f32 %v217_v19, 0.0  ;;  %v221_v23 = vadd.f32 %v220_v21, %v97_v2  ;;  %v1579_v24 = vmul.f32 %v627_v8, %v1574_v20  ;;  %v1678_v19 = vrot.slane %v1550_v0, %v112_v53 }
  0xdc   :  { %v222_v25 = vpop.f32.mrf.mxu0  ;;  %v1681_v21 = vrot.slane %v1550_v0, %v116_v54  ;;  %v556_v53 = vmul.f32 %v1647_v60, %v1569_v15  ;;  %v1722_v54 = vmul.f32 %v1650_v61, %v1569_v15 }
  0xdd   :  { %v1583_v27 = vmul.f32 %v631_v12, %v1576_v22  ;;  %v1585_v28 = vmax.f32 %v221_v23, 0.0  ;;  %v223_v30 = vadd.f32 %v222_v25, %v101_v5  ;;  %v822_v15 = vmul.f32 %v1650_v61, %v1576_v22 }
  0xde   :  { %v226_v31 = vpop.f32.mrf.mxu0 }
  0xdf   :  { %v1589_v32 = vmul.f32 %v627_v8, %v1585_v28  ;;  %v227_v33 = vadd.f32 %v226_v31, %v97_v2  ;;  %v1594_v35 = vmax.f32 %v223_v30, 0.0 }
  0xe0   :  { %v228_v36 = vpop.f32.mrf.mxu0 }
  0xe1   :  { %v1599_v38 = vmax.f32 %v227_v33, 0.0  ;;  %v229_v39 = vadd.f32 %v228_v36, %v101_v5  ;;  %v1611_v43 = vmul.f32 %v631_v12, %v1594_v35  ;;  %v1693_v33 = vrot.slane %v1162_v59, %v1553_v1 }
  0xe2   :  { %v297_v44 = vpop.f32.mrf.mxu0 }
  0xe3   :  { %v1617_v46 = vmul.f32 %v627_v8, %v1599_v38  ;;  %v1619_v47 = vmax.f32 %v229_v39, 0.0  ;;  %v298_v49 = vadd.f32 %v297_v44, %v1597_v37  ;;  %v825_v0 = vmul.f32 %v1634_v55, %v1599_v38 }
  0xe4   :  { %v299_v52 = vpop.f32.mrf.mxu0 }
  0xe5   :  { %v1637_v56 = vmul.f32 %v631_v12, %v1619_v47  ;;  %v300_v57 = vadd.f32 %v299_v52, %v1605_v41  ;;  %v1652_v2 = vmax.f32 %v298_v49, 0.0  ;;  %v1165_v12 = vld [vmem:[%s2065_s3 + $0x5] ss:$8 sm:$0x3] }
  0xe6   :  { %v303_v5 = vpop.f32.mrf.mxu0  ;;  %v1699_v36 = vrot.slane %v1165_v12, %v1545_v63  ;;  %v1707_v44 = vrot.slane %v1165_v12, %v1553_v1  ;;  %v558_v12 = vmul.f32 %v1647_v60, %v1576_v22  ;;  %v1752_v22 = vmul.f32 %v1650_v61, %v1594_v35 }
  0xe7   :  { %v1663_v8 = vmax.f32 %v300_v57, 0.0  ;;  %v304_v11 = vadd.f32 %v303_v5, %v1597_v37  ;;  %v613_v13 = vmul.f32 %v1626_v50, %v1652_v2  ;;  %v557_v5 = vmul.f32 %v1614_v45, %v1574_v20 }
  0xe8   :  { %v305_v17 = vpop.f32.mrf.mxu0 }
  0xe9   :  { %v614_v23 = vmul.f32 %v1641_v58, %v1663_v8  ;;  %v504_v25 = vmax.f32 %v304_v11, 0.0  ;;  %v306_v30 = vadd.f32 %v305_v17, %v1605_v41  ;;  %v1696_v34 = vadd.f32 %v1567_v14, %v613_v13 }
  0xea   :  { %v309_v31 = vpop.f32.mrf.mxu0  ;;  %v1713_v14 = vmul.f32 %v1634_v55, %v1563_v10  ;;  %v821_v10 = vmul.f32 %v1634_v55, %v1574_v20  ;;  %v823_v20 = vmul.f32 %v1634_v55, %v1585_v28 }
  0xeb   :  { %v615_v39 = vmul.f32 %v1626_v50, %v504_v25  ;;  %v310_v40 = vadd.f32 %v309_v31, %v1597_v37  ;;  %v505_v49 = vmax.f32 %v306_v30, 0.0  ;;  %v1716_v52 = vadd.f32 %v1572_v18, %v614_v23 }
  0xec   :  { %v311_v51 = vpop.f32.mrf.mxu0  ;;  %v559_v23 = vmul.f32 %v1614_v45, %v1585_v28  ;;  %v534_v28 = vmul.f32 %v1655_v4, %v1652_v2  ;;  %v800_v62 = vmul.f32 %v1661_v7, %v504_v25 }
  0xed   :  { %v506_v57 = vmax.f32 %v310_v40, 0.0  ;;  %v312_v59 = vadd.f32 %v311_v51, %v1605_v41  ;;  %v616_v6 = vmul.f32 %v1641_v58, %v505_v49  ;;  %v1731_v11 = vadd.f32 %v1579_v24, %v615_v39 }
  0xee   :  { %v315_v18 = vpop.f32.mrf.mxu0  ;;  %v1748_v39 = vmul.f32 %v1647_v60, %v1594_v35  ;;  %v561_v40 = vmul.f32 %v1614_v45, %v1599_v38  ;;  %v536_v35 = vmul.f32 %v1655_v4, %v504_v25  ;;  %v537_v38 = vmul.f32 %v1666_v9, %v505_v49 }
  0xef   :  { %v617_v13 = vmul.f32 %v1626_v50, %v506_v57  ;;  %v507_v17 = vmax.f32 %v312_v59, 0.0  ;;  %v316_v30 = vadd.f32 %v315_v18, %v1597_v37  ;;  %v1744_v24 = vadd.f32 %v1583_v27, %v616_v6 }
  0xf0   :  { %v317_v31 = vpop.f32.mrf.mxu0  ;;  %v535_v18 = vmul.f32 %v1666_v9, %v1663_v8  ;;  %v801_v55 = vmul.f32 %v1675_v16, %v505_v49 }
  0xf1   :  { %v618_v51 = vmul.f32 %v1641_v58, %v507_v17  ;;  %v508_v37 = vmax.f32 %v316_v30, 0.0  ;;  %v318_v27 = vadd.f32 %v317_v31, %v1605_v41  ;;  %v1761_v6 = vadd.f32 %v1589_v32, %v617_v13 }
  0xf2   :  { %v386_v59 = vpop.f32.mrf.mxu0  ;;  %v562_v41 = vmul.f32 %v1647_v60, %v1619_v47  ;;  %v826_v31 = vmul.f32 %v1650_v61, %v1619_v47  ;;  %v1792_v47 = vmul.f32 %v1675_v16, %v1663_v8  ;;  %v1796_v61 = vadd.f32 %v556_v53, %v535_v18 }
  0xf3   :  { %v387_v3 = vadd.f32 %v386_v59, %v1678_v19  ;;  %v1768_v45 = vadd.f32 %v1611_v43, %v618_v51  ;;  %v619_v30 = vmul.f32 %v1626_v50, %v508_v37  ;;  %v509_v32 = vmax.f32 %v318_v27, 0.0 }
  0xf4   :  { %v388_v13 = vpop.f32.mrf.mxu0  ;;  %v1783_v51 = vmul.f32 %v1661_v7, %v1652_v2  ;;  %v1788_v27 = vadd.f32 %v555_v48, %v534_v28  ;;  %v1804_v48 = vadd.f32 %v821_v10, %v800_v62  ;;  %v538_v28 = vmul.f32 %v1655_v4, %v506_v57 }
  0xf5   :  { %v1778_v1 = vmax.f32 %v387_v3, 0.0  ;;  %v389_v43 = vadd.f32 %v388_v13, %v1681_v21  ;;  %v620_v50 = vmul.f32 %v1641_v58, %v509_v32  ;;  %v1794_v3 = vadd.f32 %v557_v5, %v536_v35 }
  0xf6   :  { %v392_v60 = vpop.f32.mrf.mxu0  ;;  %v648_v58 = vadd.f32 %v1617_v46, %v619_v30  ;;  %v802_v8 = vmul.f32 %v1661_v7, %v506_v57  ;;  %v1809_v35 = vadd.f32 %v558_v12, %v537_v38  ;;  %v1811_v13 = vadd.f32 %v822_v15, %v801_v55 }
  0xf7   :  { %v1798_v25 = vmax.f32 %v389_v43, 0.0  ;;  %v393_v2 = vadd.f32 %v392_v60, %v1678_v19  ;;  %v663_v49 = vmul.f32 %v1699_v36, %v1778_v1  ;;  %v539_v60 = vmul.f32 %v1666_v9, %v507_v17 }
  0xf8   :  { %v394_v59 = vpop.f32.mrf.mxu0  ;;  %v803_v62 = vmul.f32 %v1675_v16, %v507_v17  ;;  %v540_v46 = vmul.f32 %v1655_v4, %v508_v37  ;;  %v804_v57 = vmul.f32 %v1661_v7, %v508_v37  ;;  %v567_v38 = vadd.f32 %v559_v23, %v538_v28 }
  0xf9   :  { %v395_v5 = vadd.f32 %v394_v59, %v1681_v21  ;;  %v512_v53 = vmax.f32 %v393_v2, 0.0  ;;  %v1814_v43 = vadd.f32 %v663_v49, %v1696_v34  ;;  %v664_v12 = vmul.f32 %v1707_v44, %v1798_v25 }
  0xfa   :  { %v398_v18 = vpop.f32.mrf.mxu0  ;;  %v541_v34 = vmul.f32 %v1666_v9, %v509_v32  ;;  %v831_v17 = vadd.f32 %v823_v20, %v802_v8  ;;  %v805_v4 = vmul.f32 %v1675_v16, %v509_v32  ;;  %v569_v37 = vadd.f32 %v561_v40, %v540_v46 }
  0xfb   :  { %v399_v10 = vadd.f32 %v398_v18, %v1678_v19  ;;  %v513_v30 = vmax.f32 %v395_v5, 0.0  ;;  %v665_v15 = vmul.f32 %v1699_v36, %v512_v53  ;;  %v1828_v18 = vadd.f32 %v664_v12, %v1716_v52 }
  0xfc   :  { %v400_v2 = vpop.f32.mrf.mxu0  ;;  %v568_v23 = vadd.f32 %v1748_v39, %v539_v60  ;;  %v832_v9 = vadd.f32 %v1752_v22, %v803_v62  ;;  %v833_v28 = vadd.f32 %v825_v0, %v804_v57  ;;  %v584_v52 = vmul.f32 %v1686_v26, %v1778_v1 }
  0xfd   :  { %v514_v55 = vmax.f32 %v399_v10, 0.0  ;;  %v401_v59 = vadd.f32 %v400_v2, %v1681_v21  ;;  %v1831_v7 = vadd.f32 %v665_v15, %v1731_v11  ;;  %v666_v20 = vmul.f32 %v1707_v44, %v513_v30 }
  0xfe   :  { %v404_v49 = vpop.f32.mrf.mxu0  ;;  %v570_v40 = vadd.f32 %v562_v41, %v541_v34  ;;  %v834_v39 = vadd.f32 %v826_v31, %v805_v4  ;;  %v586_v8 = vmul.f32 %v1686_v26, %v512_v53  ;;  %v649_v31 = vadd.f32 %v1637_v56, %v620_v50 }
  0xff   :  { %v405_v5 = vadd.f32 %v404_v49, %v1678_v19  ;;  %v515_v10 = vmax.f32 %v401_v59, 0.0  ;;  %v667_v16 = vmul.f32 %v1699_v36, %v514_v55  ;;  %v585_v19 = vmul.f32 %v1693_v33, %v1798_v25 }
 0x100   :  { %v406_v2 = vpop.f32.mrf.mxu0  ;;  %v1844_v22 = vadd.f32 %v666_v20, %v1744_v24  ;;  %v588_v60 = vmul.f32 %v1686_v26, %v514_v55  ;;  %v852_v34 = vmul.f32 %v1689_v29, %v514_v55  ;;  %v851_v56 = vmul.f32 %v1704_v42, %v513_v30 }
 0x101   :  { %v516_v32 = vmax.f32 %v405_v5, 0.0  ;;  %v407_v11 = vadd.f32 %v406_v2, %v1681_v21  ;;  %v1847_v0 = vadd.f32 %v667_v16, %v1761_v6  ;;  %v668_v41 = vmul.f32 %v1707_v44, %v515_v10  ;;  %v1030_v16 = vld [vmem:[%s2068_s5 + $0xe8] sm:$0xff] }
 0x102   :  { %v589_v24 = vmul.f32 %v1693_v33, %v515_v10  ;;  %v853_v6 = vmul.f32 %v1704_v42, %v515_v10  ;;  %v850_v5 = vmul.f32 %v1689_v29, %v512_v53 }
 0x103   :  { %v590_v62 = vmul.f32 %v1686_v26, %v516_v32  ;;  %v517_v46 = vmax.f32 %v407_v11, 0.0  ;;  %v854_v21 = vmul.f32 %v1689_v29, %v516_v32  ;;  %v669_v57 = vmul.f32 %v1699_v36, %v516_v32  ;;  %v521_v32 = vld [vmem:[%s2066_s7 + $0x18] sm:$0xff] }
 0x104   :  { %v1862_v26 = vadd.f32 %v668_v41, %v1768_v45  ;;  %v587_v36 = vmul.f32 %v1693_v33, %v513_v30  ;;  %v849_v45 = vmul.f32 %v1704_v42, %v1798_v25  ;;  %v861_v55 = vadd.f32 %v853_v6, %v832_v9  ;;  %v520_v9 = vld [vmem:[%s2066_s7 + $0x10] sm:$0xff]  ;;  %v784_v11 = vld [vmem:[%s2067_s8 + $0x18] sm:$0xff]  ;;  %v1025_v41 = vld [vmem:[%s2068_s5 + $0xc0] sm:$0xff] }
 0x105   :  { %v591_v12 = vmul.f32 %v1693_v33, %v517_v46  ;;  %v855_v15 = vmul.f32 %v1704_v42, %v517_v46  ;;  %v1864_v59 = vadd.f32 %v669_v57, %v648_v58  ;;  %v670_v4 = vmul.f32 %v1707_v44, %v517_v46  ;;  %v1026_v46 = vld [vmem:[%s2068_s5 + $0xc8] sm:$0xff]  ;;  %v1009_v57 = vld [vmem:[%s2068_s5 + $0x40] sm:$0xff]  ;;  %v1023_v6 = vld [vmem:[%s2068_s5 + $0xb0] sm:$0xff] }
 0x106   :  { %v598_v10 = vadd.f32 %v590_v62, %v569_v37  ;;  %v862_v2 = vadd.f32 %v854_v21, %v833_v28  ;;  %v597_v58 = vadd.f32 %v589_v24, %v568_v23  ;;  %v848_v33 = vmul.f32 %v1689_v29, %v1778_v1  ;;  %v1015_v23 = vld [vmem:[%s2068_s5 + $0x70] sm:$0xff]  ;;  %v1010_v21 = vld [vmem:[%s2068_s5 + $0x48] sm:$0xff]  ;;  %v1008_v24 = vld [vmem:[%s2068_s5 + $0x38] sm:$0xff] }
 0x107   :  { %v599_v50 = vadd.f32 %v591_v12, %v570_v40  ;;  %v863_v49 = vadd.f32 %v855_v15, %v834_v39  ;;  %v1870_v20 = vadd.f32 %v670_v4, %v649_v31  ;;  %v596_v44 = vadd.f32 %v588_v60, %v567_v38  ;;  %v783_v28 = vld [vmem:[%s2067_s8 + $0x10] sm:$0xff]  ;;  %v1029_v40 = vld [vmem:[%s2068_s5 + $0xe0] sm:$0xff]  ;;  %v1028_v39 = vld [vmem:[%s2068_s5 + $0xd8] sm:$0xff] }
 0x108   :  { %v860_v30 = vadd.f32 %v852_v34, %v831_v17  ;;  %v595_v53 = vadd.f32 %v587_v36, %v1809_v35  ;;  %v859_v37 = vadd.f32 %v851_v56, %v1811_v13  ;;  %v828_v42 = vadd.f32 %v1722_v54, %v1792_v47  ;;  %v781_v54 = vld [vmem:[%s2067_s8] sm:$0xff]  ;;  %v1027_v60 = vld [vmem:[%s2068_s5 + $0xd0] sm:$0xff]  ;;  %v1024_v31 = vld [vmem:[%s2068_s5 + $0xb8] sm:$0xff] }
 0x109   :  { %716 = vmatprep.subr.mxu1 %v599_v50  ;;  %900 = vmatprep.subr.mxu0 %v863_v49  ;;  %v827_v25 = vadd.f32 %v1713_v14, %v1783_v51  ;;  %v594_v1 = vadd.f32 %v586_v8, %v1794_v3  ;;  %v858_v29 = vadd.f32 %v850_v5, %v1804_v48  ;;  %v518_v14 = vld [vmem:[%s2066_s7] sm:$0xff]  ;;  %v1032_v51 = vld [vmem:[%s2068_s5 + $0xf8] sm:$0xff]  ;;  %v2080_v47 = vmov 0.0   ;;  %v519_v3 = vld [vmem:[%s2066_s7 + $0x8] sm:$0xff] }
 0x10a   :  { %717 = vmatpush1.msra.mxu1 %v598_v10  ;;  %901 = vmatpush1.msra.mxu0 %v862_v2  ;;  %v593_v38 = vadd.f32 %v585_v19, %v1796_v61  ;;  %v857_v17 = vadd.f32 %v849_v45, %v828_v42  ;;  %v592_v35 = vadd.f32 %v584_v52, %v1788_v27  ;;  %v1016_v27 = vld [vmem:[%s2068_s5 + $0x78] sm:$0xff]  ;;  %v782_v61 = vld [vmem:[%s2067_s8 + $0x8] sm:$0xff]  ;;  %v1031_v48 = vld [vmem:[%s2068_s5 + $0xf0] sm:$0xff] }
 0x10b   :  { %718 = vmatprep.subr.mxu1 %v597_v58  ;;  %902 = vmatprep.subr.mxu0 %v861_v55  ;;  %v856_v13 = vadd.f32 %v848_v33, %v827_v25  ;;  %v1014_v52 = vld [vmem:[%s2068_s5 + $0x68] sm:$0xff]  ;;  %v1013_v19 = vld [vmem:[%s2068_s5 + $0x60] sm:$0xff]  ;;  %v1012_v8 = vld [vmem:[%s2068_s5 + $0x58] sm:$0xff]  ;;  %v2020_v55 = vpop.f32.mrf.mxu1 }
 0x10c   :  { %719 = vmatpush1.msra.mxu1 %v596_v44  ;;  %903 = vmatpush1.msra.mxu0 %v860_v30  ;;  %v1011_v62 = vld [vmem:[%s2068_s5 + $0x50] sm:$0xff]  ;;  %v1022_v15 = vld [vmem:[%s2068_s5 + $0xa8] sm:$0xff]  ;;  %v1021_v4 = vld [vmem:[%s2068_s5 + $0xa0] sm:$0xff] }
 0x10d   :  { %720 = vmatprep.subr.mxu1 %v595_v53  ;;  %904 = vmatprep.subr.mxu0 %v859_v37  ;;  %v1007_v12 = vld [vmem:[%s2068_s5 + $0x30] sm:$0xff]  ;;  %v1006_v34 = vld [vmem:[%s2068_s5 + $0x28] sm:$0xff]  ;;  %v1005_v36 = vld [vmem:[%s2068_s5 + $0x20] sm:$0xff]  ;;  %v2022_v33 = vpop.f32.mrf.mxu1 }
 0x10e   :  { %721 = vmatpush1.msra.mxu1 %v594_v1  ;;  %905 = vmatpush1.msra.mxu0 %v858_v29  ;;  %v1020_v56 = vld [vmem:[%s2068_s5 + $0x98] sm:$0xff]  ;;  %v1019_v49 = vld [vmem:[%s2068_s5 + $0x90] sm:$0xff]  ;;  %v1018_v10 = vld [vmem:[%s2068_s5 + $0x88] sm:$0xff] }
 0x10f   :  { %722 = vmatprep.subr.mxu1 %v593_v38  ;;  %906 = vmatprep.subr.mxu0 %v857_v17  ;;  %v1004_v50 = vld [vmem:[%s2068_s5 + $0x18] sm:$0xff]  ;;  %v1003_v5 = vld [vmem:[%s2068_s5 + $0x10] sm:$0xff]  ;;  %v1002_v2 = vld [vmem:[%s2068_s5 + $0x8] sm:$0xff]  ;;  %v2024_v44 = vpop.f32.mrf.mxu1 }
 0x110   :  { %723 = vmatpush1.msra.mxu1 %v592_v35  ;;  %907 = vmatpush1.msra.mxu0 %v856_v13  ;;  %v1017_v45 = vld [vmem:[%s2068_s5 + $0x80] sm:$0xff]  ;;  %v2081_v13 = vld [vmem:[#allocation4_spill] sm:$0xff] }
 0x111   :  { %1166 = vmatmul.mubr.msk.f32.vlgmr.msra.gmra.mxu1 %vm679_vm1, %v518_v14  ;;  %1173 = vmatmul.mubr.msk.f32.vlgmr.msra.gmra.mxu0 %vm679_vm1, %v781_v54  ;;  %v1001_v58 = vld [vmem:[%s2068_s5] sm:$0xff]  ;;  %v2026_v30 = vpop.f32.mrf.mxu1 }
 0x112   :  { %762 = vmatprep.mubr.f32.mxu1 %v2080_v47  ;;  %946 = vmatprep.mubr.f32.mxu0 %v2080_v47  ;;  %v973_v53 = vld [vmem:[%s2069_s4] sm:$0x3] }
 0x113   :  { %1190 = vmatprep.subr.mxu1 %v1032_v51  ;;  %v978_v29 = vrot.slane %v973_v53, %v1545_v63  ;;  %v982_v14 = vrot.slane %v973_v53, %v2081_v13 }
 0x114   :  { %1191 = vmatpush3.msra.mxu1 %v1016_v27 }
 0x115   :  { %1167 = vmatmul.mubr.msk.f32.gmra.mxu1 %vm679_vm1, %v519_v3  ;;  %1174 = vmatmul.mubr.msk.f32.gmra.mxu0 %vm679_vm1, %v782_v61 }
 0x116   :  { %768 = vmatprep.mubr.f32.mxu1 %v2080_v47  ;;  %952 = vmatprep.mubr.f32.mxu0 %v2080_v47 }
 0x117   :  { %1192 = vmatprep.subr.mxu1 %v1031_v48 }
 0x118   :  { %1193 = vmatpush3.msra.mxu1 %v1015_v23 }
 0x119   :  { %1168 = vmatmul.mubr.msk.f32.gmra.mxu1 %vm679_vm1, %v520_v9  ;;  %1175 = vmatmul.mubr.msk.f32.gmra.mxu0 %vm679_vm1, %v783_v28 }
 0x11a   :  { %774 = vmatprep.mubr.f32.mxu1 %v2080_v47  ;;  %958 = vmatprep.mubr.f32.mxu0 %v2080_v47 }
 0x11b   :  { %1194 = vmatprep.subr.mxu1 %v1030_v16 }
 0x11c   :  { %1195 = vmatpush3.msra.mxu1 %v1014_v52 }
 0x11d   :  { %1169 = vmatmul.mubr.msk.f32.gmra.mxu1 %vm679_vm1, %v521_v32  ;;  %1176 = vmatmul.mubr.msk.f32.gmra.mxu0 %vm679_vm1, %v784_v11 }
 0x11e   :  { %1196 = vmatprep.subr.mxu1 %v1029_v40 }
 0x11f   :  { %1197 = vmatpush3.msra.mxu1 %v1013_v19 }
 0x120   :  { %1198 = vmatprep.subr.mxu1 %v1028_v39 }
 0x121   :  { %1199 = vmatpush3.msra.mxu1 %v1012_v8 }
 0x122   :  { %1200 = vmatprep.subr.mxu1 %v1027_v60 }
 0x123   :  { %1201 = vmatpush3.msra.mxu1 %v1011_v62 }
 0x124   :  { %1202 = vmatprep.subr.mxu1 %v1026_v46 }
 0x125   :  { %1203 = vmatpush3.msra.mxu1 %v1010_v21 }
 0x126   :  { %1204 = vmatprep.subr.mxu1 %v1025_v41 }
 0x127   :  { %1205 = vmatpush3.msra.mxu1 %v1009_v57 }
 0x128   :  { %1206 = vmatprep.subr.mxu1 %v1024_v31 }
 0x129   :  { %1207 = vmatpush3.msra.mxu1 %v1008_v24 }
 0x12a   :  { %1208 = vmatprep.subr.mxu1 %v1023_v6 }
 0x12b   :  { %1209 = vmatpush3.msra.mxu1 %v1007_v12 }
 0x12c   :  { %1210 = vmatprep.subr.mxu1 %v1022_v15 }
 0x12d   :  { %1211 = vmatpush3.msra.mxu1 %v1006_v34 }
 0x12e   :  { %1212 = vmatprep.subr.mxu1 %v1021_v4 }
 0x12f   :  { %1213 = vmatpush3.msra.mxu1 %v1005_v36 }
 0x130   :  { %1214 = vmatprep.subr.mxu1 %v1020_v56 }
 0x131   :  { %1215 = vmatpush3.msra.mxu1 %v1004_v50  ;;  %v2082_v50 = vld [vmem:[#allocation2_spill] sm:$0xff] }
 0x132   :  { %1216 = vmatprep.subr.mxu1 %v1019_v49  ;;  %v120_v49 = vsub.s32 6, %v2082_v50 }
 0x133   :  { %1217 = vmatpush3.msra.mxu1 %v1003_v5 }
 0x134   :  { %1218 = vmatprep.subr.mxu1 %v1018_v10 }
 0x135   :  { %1219 = vmatpush3.msra.mxu1 %v1002_v2  ;;  %v2083_v2 = vld [vmem:[#allocation3_spill] sm:$0xff] }
 0x136   :  { %1220 = vmatprep.subr.mxu1 %v1017_v45  ;;  %v121_v45 = vrot.slane %v2083_v2, %v120_v49 }
 0x137   :  { %1221 = vmatpush3.msra.mxu1 %v1001_v58 }
 0x1d1   :  { %v758_v37 = vpop.f32.mrf.mxu1  ;;  %v942_v42 = vpop.f32.mrf.mxu0 }
 0x1d2   :  { %v759_v25 = vadd.f32 %v758_v37, %v1814_v43 }
 0x1d3   :  { %v760_v1 = vpop.f32.mrf.mxu1  ;;  %v944_v38 = vpop.f32.mrf.mxu0 }
 0x1d4   :  { %v761_v17 = vadd.f32 %v760_v1, %v1828_v18  ;;  %v965_v35 = vadd.f32 %v942_v42, %v759_v25  ;;  %v476_v25 = vadd.f32 %v2022_v33, %v121_v45  ;;  %v486_v33 = vadd.f32 %v2026_v30, %v121_v45 }
 0x1d5   :  { %v764_v54 = vpop.f32.mrf.mxu1  ;;  %v948_v51 = vpop.f32.mrf.mxu0 }
 0x1d6   :  { %v765_v27 = vadd.f32 %v764_v54, %v1831_v7  ;;  %v966_v47 = vadd.f32 %v944_v38, %v761_v17  ;;  %v985_v3 = vadd.f32 %v978_v29, %v965_v35 }
 0x1d7   :  { %v766_v61 = vpop.f32.mrf.mxu1  ;;  %v950_v48 = vpop.f32.mrf.mxu0 }
 0x1d8   :  { %v986_v23 = vadd.f32 %v982_v14, %v966_v47  ;;  %v767_v43 = vadd.f32 %v766_v61, %v1844_v22  ;;  %v967_v9 = vadd.f32 %v948_v51, %v765_v27  ;;  %v993_v32 = vmax.f32 %v985_v3, 0.0 }
 0x1d9   :  { %v770_v28 = vpop.f32.mrf.mxu1  ;;  %v954_v63 = vpop.f32.mrf.mxu0 }
 0x1da   :  { %v994_v16 = vmax.f32 %v986_v23, 0.0  ;;  %v771_v18 = vadd.f32 %v770_v28, %v1847_v0  ;;  %v968_v52 = vadd.f32 %v950_v48, %v767_v43  ;;  %v987_v11 = vadd.f32 %v978_v29, %v967_v9 }
 0x1db   :  { %v772_v40 = vpop.f32.mrf.mxu1  ;;  %v956_v19 = vpop.f32.mrf.mxu0 }
 0x1dc   :  { %v988_v39 = vadd.f32 %v982_v14, %v968_v52  ;;  %v773_v7 = vadd.f32 %v772_v40, %v1862_v26  ;;  %v969_v8 = vadd.f32 %v954_v63, %v771_v18  ;;  %1104 = vmatprep.mubr.f32.mxu1 %v994_v16  ;;  %v995_v41 = vmax.f32 %v987_v11, 0.0 }
 0x1dd   :  { %v776_v60 = vpop.f32.mrf.mxu1  ;;  %1105 = vmatmul.mubr.f32.vlgmr.msra.gmra.mxu1 %v993_v32  ;;  %v960_v62 = vpop.f32.mrf.mxu0  ;;  %v491_v63 = vadd.f32 %v2024_v44, %v121_v45 }
 0x1de   :  { %v996_v22 = vmax.f32 %v988_v39, 0.0  ;;  %v777_v46 = vadd.f32 %v776_v60, %v1864_v59  ;;  %v970_v21 = vadd.f32 %v956_v19, %v773_v7  ;;  %v989_v57 = vadd.f32 %v978_v29, %v969_v8 }
 0x1df   :  { %v778_v0 = vpop.f32.mrf.mxu1  ;;  %v962_v12 = vpop.f32.mrf.mxu0 }
 0x1e0   :  { %v990_v31 = vadd.f32 %v982_v14, %v970_v21  ;;  %v779_v24 = vadd.f32 %v778_v0, %v1870_v20  ;;  %v971_v6 = vadd.f32 %v960_v62, %v777_v46  ;;  %1109 = vmatprep.mubr.f32.mxu1 %v996_v22  ;;  %v997_v34 = vmax.f32 %v989_v57, 0.0  ;;  %v1177_v20 = vld [vmem:[%s2070_s6] ss:$0 sm:$0xff] }
 0x1e1   :  { %1110 = vmatmul.mubr.f32.gmra.mxu1 %v995_v41 }
 0x1e2   :  { %v998_v26 = vmax.f32 %v990_v31, 0.0  ;;  %v972_v15 = vadd.f32 %v962_v12, %v779_v24  ;;  %v991_v4 = vadd.f32 %v978_v29, %v971_v6 }
 0x1e4   :  { %v992_v36 = vadd.f32 %v982_v14, %v972_v15  ;;  %1114 = vmatprep.mubr.f32.mxu1 %v998_v26  ;;  %v999_v59 = vmax.f32 %v991_v4, 0.0  ;;  %v481_v14 = vadd.f32 %v2020_v55, %v121_v45 }
 0x1e5   :  { %1115 = vmatmul.mubr.f32.gmra.mxu1 %v997_v34 }
 0x1e6   :  { %v1000_v56 = vmax.f32 %v992_v36, 0.0 }
 0x1e8   :  { %1119 = vmatprep.mubr.f32.mxu1 %v1000_v56 }
 0x1e9   :  { %1120 = vmatmul.mubr.f32.gmra.mxu1 %v999_v59 }
 0x29d   :  { %v1222_v5 = vpop.f32.mrf.mxu1 }
 0x29f   :  { %v1223_v10 = vpop.f32.mrf.mxu1 }
 0x2a0   :  { %v1224_v58 = vadd.f32 %v1223_v10, %v1222_v5 }
 0x2a1   :  { %v1225_v53 = vpop.f32.mrf.mxu1 }
 0x2a2   :  { %v1107_v37 = vadd.f32 %v1224_v58, %v1177_v20 }
 0x2a3   :  { %v1226_v42 = vpop.f32.mrf.mxu1 }
 0x2a4   :  { %v1125_v1 = vmax.f32 %v1107_v37, 0.0  ;;  %v1227_v29 = vadd.f32 %v1226_v42, %v1225_v53 }
 0x2a5   :  { %v1228_v38 = vpop.f32.mrf.mxu1 }
 0x2a6   :  { %v1129_v17 = vadd.f32 %v1125_v1, %v476_v25  ;;  %v1112_v35 = vadd.f32 %v1227_v29, %v1177_v20 }
 0x2a7   :  { %v1229_v13 = vpop.f32.mrf.mxu1 }
 0x2a8   :  { %v1133_v54 = vmax.f32 %v1129_v17, 0.0  ;;  %v1126_v51 = vmax.f32 %v1112_v35, 0.0  ;;  %v1230_v27 = vadd.f32 %v1229_v13, %v1228_v38 }
 0x2a9   :  { %v1231_v47 = vpop.f32.mrf.mxu1 }
 0x2aa   :  { %1137 = vst [vmem:[%s2071_s9] sm:$0xff] %v1133_v54  ;;  %v1130_v3 = vadd.f32 %v1126_v51, %v481_v14  ;;  %v1117_v61 = vadd.f32 %v1230_v27, %v1177_v20 }
 0x2ab   :  { %v1232_v48 = vpop.f32.mrf.mxu1 }
 0x2ac   :  { %v1134_v23 = vmax.f32 %v1130_v3, 0.0  ;;  %v1127_v43 = vmax.f32 %v1117_v61, 0.0  ;;  %v1233_v9 = vadd.f32 %v1232_v48, %v1231_v47 }
 0x2ae   :  { %1138 = vst [vmem:[%s2071_s9 + $0x8] sm:$0xff] %v1134_v23  ;;  %v1131_v55 = vadd.f32 %v1127_v43, %v486_v33  ;;  %v1122_v28 = vadd.f32 %v1233_v9, %v1177_v20 }
 0x2b0   :  { %v1135_v16 = vmax.f32 %v1131_v55, 0.0  ;;  %v1128_v18 = vmax.f32 %v1122_v28, 0.0 }
 0x2b2   :  { %1139 = vst [vmem:[%s2071_s9 + $0x10] sm:$0xff] %v1135_v16  ;;  %v1132_v52 = vadd.f32 %v1128_v18, %v491_v63 }
 0x2b4   :  { %v1136_v32 = vmax.f32 %v1132_v52, 0.0 }
 0x2b6   :  { %1140 = vst [vmem:[%s2071_s9 + $0x18] sm:$0xff] %v1136_v32 }

</bundles_post_ra>
